<compile_context>
chip_gen: v5e
topology: v5e:2x2
jax: 0.10.0
libtpu: 0.0.40
codegen_flags: <defaults>
</compile_context>

<pallas_src>
import jax
import jax.numpy as jnp
from jax.experimental import pallas as pl
from jax.experimental.pallas import tpu as pltpu

N_CLASSES = 2
IN_FEATURES = 1 * 256 * 256   # 65536
HIDDEN = 10


# --------------------------------------------------------------------------
# Fully fused single-core kernel (v5e / v6e / default).
# --------------------------------------------------------------------------
def _net_fused_kernel(x_ref, w1t_ref, b1_ref, w2_ref, b2_ref, w3_ref, b3_ref,
                      o_ref, acc_ref):
    """Grid axis 0 walks the K=65536 reduction in tk chunks.

    x_ref:   (B, tk)        bf16   lane dim = reduction chunk
    w1t_ref: (HIDDEN, tk)   bf16   lane-dense transposed W1 chunk
    b1/w2/b2/w3/b3:          f32   tiny full-block params
    o_ref:   (B, N_CLASSES) f32    logits (written on last step only)
    acc_ref: (B, HIDDEN)    f32    resident l1 accumulator (VMEM scratch)
    """
    k = pl.program_id(0)

    @pl.when(k == 0)
    def _():
        acc_ref[...] = jnp.zeros_like(acc_ref)

    # Contract the lane (last) dim of both operands on the MXU (A @ B^T form;
    # no relayout of the (10, tk) tile is required for this contraction).
    acc_ref[...] += jax.lax.dot_general(
        x_ref[...], w1t_ref[...],
        dimension_numbers=(((1,), (1,)), ((), ())),
        preferred_element_type=jnp.float32)

    # Fused epilogue on the final reduction step: b1 + ReLU, l2, residual, l3.
    @pl.when(k == pl.num_programs(0) - 1)
    def _():
        h1 = jnp.maximum(acc_ref[...] + b1_ref[...], 0.0)
        h2 = jnp.maximum(
            jnp.dot(h1, w2_ref[...], preferred_element_type=jnp.float32)
            + b2_ref[...], 0.0)
        do = h2 + h1   # Dropout(0.2) is identity in eval mode.
        o_ref[...] = (jnp.dot(do, w3_ref[...], preferred_element_type=jnp.float32)
                      + b3_ref[...])


def _forward_fused(x, w1t, b1, w2, b2, w3, b3, *, tk):
    B, F = x.shape
    assert F % tk == 0
    n_k = F // tk

    flops = 2 * B * F * HIDDEN
    bytes_accessed = (x.size * x.dtype.itemsize
                      + w1t.size * w1t.dtype.itemsize
                      + B * N_CLASSES * 4)

    return pl.pallas_call(
        _net_fused_kernel,
        out_shape=jax.ShapeDtypeStruct((B, N_CLASSES), jnp.float32),
        grid_spec=pltpu.PrefetchScalarGridSpec(
            num_scalar_prefetch=0,
            grid=(n_k,),                              # reduction axis only
            in_specs=[
                pl.BlockSpec((B, tk), lambda k: (0, k)),
                pl.BlockSpec((HIDDEN, tk), lambda k: (0, k)),
                pl.BlockSpec((1, HIDDEN), lambda k: (0, 0)),
                pl.BlockSpec((HIDDEN, HIDDEN), lambda k: (0, 0)),
                pl.BlockSpec((1, HIDDEN), lambda k: (0, 0)),
                pl.BlockSpec((HIDDEN, N_CLASSES), lambda k: (0, 0)),
                pl.BlockSpec((1, N_CLASSES), lambda k: (0, 0)),
            ],
            out_specs=pl.BlockSpec((B, N_CLASSES), lambda k: (0, 0)),
            scratch_shapes=[pltpu.VMEM((B, HIDDEN), jnp.float32)],
        ),
        compiler_params=pltpu.CompilerParams(
            dimension_semantics=("arbitrary",)),
        cost_estimate=pl.CostEstimate(
            flops=flops, transcendentals=0, bytes_accessed=bytes_accessed),
    )(x, w1t, b1, w2, b2, w3, b3)


# --------------------------------------------------------------------------
# Split-K kernel for dual-TensorCore chips (v7x): each core streams half of K.
# --------------------------------------------------------------------------
def _l1_splitk_kernel(x_ref, w1t_ref, o_ref):
    @pl.when(pl.program_id(1) == 0)
    def _():
        o_ref[...] = jnp.zeros_like(o_ref)

    o_ref[...] += jax.lax.dot_general(
        x_ref[...], w1t_ref[...],
        dimension_numbers=(((1,), (1,)), ((), ())),
        preferred_element_type=jnp.float32)


def _forward_splitk(x, w1t, b1, w2, b2, w3, b3, *, tk, num_cores):
    B, F = x.shape
    assert F % (num_cores * tk) == 0
    n_k = F // (num_cores * tk)          # reduction steps per core

    flops = 2 * B * F * HIDDEN
    bytes_accessed = (x.size * x.dtype.itemsize
                      + w1t.size * w1t.dtype.itemsize
                      + num_cores * B * HIDDEN * 4)

    partials = pl.pallas_call(
        _l1_splitk_kernel,
        out_shape=jax.ShapeDtypeStruct((num_cores, B, HIDDEN), jnp.float32),
        grid_spec=pltpu.PrefetchScalarGridSpec(
            num_scalar_prefetch=0,
            grid=(num_cores, n_k),                   # core axis, then reduction
            in_specs=[
                pl.BlockSpec((B, tk), lambda c, k: (0, c * n_k + k)),
                pl.BlockSpec((HIDDEN, tk), lambda c, k: (0, c * n_k + k)),
            ],
            out_specs=pl.BlockSpec((None, B, HIDDEN), lambda c, k: (c, 0, 0)),
        ),
        compiler_params=pltpu.CompilerParams(
            # CORE_PARALLEL actually shards the leading axis across the two
            # TensorCores (plain "parallel" has near-zero codegen impact).
            dimension_semantics=(pltpu.CORE_PARALLEL, pltpu.ARBITRARY)),
        cost_estimate=pl.CostEstimate(
            flops=flops, transcendentals=0, bytes_accessed=bytes_accessed),
    )(x, w1t)

    # Tiny cross-core combine + epilogue (O(B*10)) in plain JAX.
    h1 = jax.nn.relu(jnp.sum(partials, axis=0) + b1)
    h2 = jax.nn.relu(jnp.dot(h1, w2, preferred_element_type=jnp.float32) + b2)
    do = h2 + h1                          # Dropout(0.2) identity in eval mode
    return jnp.dot(do, w3, preferred_element_type=jnp.float32) + b3


# --------------------------------------------------------------------------
# Public wrapper.
# --------------------------------------------------------------------------
def _default_num_cores():
    """2 on dual-TensorCore chips (v7x), else 1. Conservative on failure."""
    try:
        kind = jax.devices()[0].device_kind.lower()
        if "v7" in kind:
            return 2
    except Exception:
        pass
    return 1


def net_forward(x, w1t, b1, w2, b2, w3, b3, *, tk=8192, num_cores=None):
    """Forward pass of Net.

    x:   (B, 65536) bf16/f32 flattened image, batch-major (B multiple of 8).
    w1t: (10, 65536) bf16  -- l1 weight stored transposed & lane-dense.
    b1:  (1, 10) f32; w2: (10, 10) f32; b2: (1, 10) f32;
    w3:  (10, 2) f32; b3: (1, 2) f32.
    Returns (B, 2) f32 logits.
    """
    B, F = x.shape
    assert F == IN_FEATURES
    assert w1t.shape == (HIDDEN, F)

    if num_cores is None:
        num_cores = _default_num_cores()

    if num_cores == 1:
        return _forward_fused(x, w1t, b1, w2, b2, w3, b3, tk=tk)
    return _forward_splitk(x, w1t, b1, w2, b2, w3, b3,
                           tk=tk, num_cores=num_cores)


def init_params(key):
    """nn.Linear-style U(-1/sqrt(fan_in), 1/sqrt(fan_in)) init.

    W1 is stored transposed (HIDDEN, IN_FEATURES) in bf16 (streamed operand);
    all small params stay f32.
    """
    ks = jax.random.split(key, 6)

    def uni(k, shape, bound, dtype=jnp.float32):
        return jax.random.uniform(k, shape, jnp.float32, -bound, bound).astype(dtype)

    b1_bound = 1.0 / (IN_FEATURES ** 0.5)
    b2_bound = 1.0 / (HIDDEN ** 0.5)
    w1t = uni(ks[0], (HIDDEN, IN_FEATURES), b1_bound, jnp.bfloat16)
    b1 = uni(ks[1], (1, HIDDEN), b1_bound)
    w2 = uni(ks[2], (HIDDEN, HIDDEN), b2_bound)
    b2 = uni(ks[3], (1, HIDDEN), b2_bound)
    w3 = uni(ks[4], (HIDDEN, N_CLASSES), b2_bound)
    b3 = uni(ks[5], (1, N_CLASSES), b2_bound)
    return w1t, b1, w2, b2, w3, b3


def net_reference(x, w1t, b1, w2, b2, w3, b3):
    h1 = jax.nn.relu(jnp.dot(x, w1t.T, preferred_element_type=jnp.float32) + b1)
    h2 = jax.nn.relu(jnp.dot(h1, w2, preferred_element_type=jnp.float32) + b2)
    do = h2 + h1                          # Dropout(0.2) identity in eval mode
    return jnp.dot(do, w3, preferred_element_type=jnp.float32) + b3


if __name__ == "__main__":
    key = jax.random.PRNGKey(0)
    k_x, k_p = jax.random.split(key)

    B = 8   # small test batch; larger B amortizes the fixed W1 stream.
    # Streamed input in bf16 (halves HBM traffic); accumulation stays f32.
    x = jax.random.normal(k_x, (B, IN_FEATURES), jnp.float32).astype(jnp.bfloat16)
    params = init_params(k_p)

    forward = jax.jit(net_forward)
    try:
        logits = jax.block_until_ready(forward(x, *params))
    except Exception:
        # Safety net: the single-core fused path compiles on every TPU gen.
        forward = jax.jit(lambda xx, *p: net_forward(xx, *p, num_cores=1))
        logits = jax.block_until_ready(forward(x, *params))

    ref = jax.block_until_ready(net_reference(x, *params))
    assert logits.shape == (B, N_CLASSES)
    max_err = float(jnp.max(jnp.abs(logits - ref)))
    assert jnp.allclose(logits, ref, atol=1e-2, rtol=1e-2), f"max abs err {max_err}"

    print("KERNEL_OK")
</pallas_src>

<mosaic_0001>
module attributes {stable_mosaic.version = 11 : i64} {
  func.func @_net_fused_kernel(%arg0: i32, %arg1: memref<8x8192xbf16, #tpu.memory_space<vmem>>, %arg2: memref<10x8192xbf16, #tpu.memory_space<vmem>>, %arg3: memref<1x10xf32, #tpu.memory_space<vmem>>, %arg4: memref<10x10xf32, #tpu.memory_space<vmem>>, %arg5: memref<1x10xf32, #tpu.memory_space<vmem>>, %arg6: memref<10x2xf32, #tpu.memory_space<vmem>>, %arg7: memref<1x2xf32, #tpu.memory_space<vmem>>, %arg8: memref<8x2xf32, #tpu.memory_space<vmem>>, %arg9: memref<8x10xf32, #tpu.memory_space<vmem>>) attributes {dimension_semantics = [#tpu.dimension_semantics<arbitrary>], iteration_bounds = array<i64: 8>, scalar_prefetch = 0 : i64, scratch_operands = 1 : i64, tpu.core_type = #tpu.core_type<tc>, window_params = [{transform_indices = @transform_0, window_bounds = array<i64: 8, 8192>}, {transform_indices = @transform_1, window_bounds = array<i64: 10, 8192>}, {pipeline_mode = #tpu.pipeline_mode<synchronous>, transform_indices = @transform_2, window_bounds = array<i64: 1, 10>}, {pipeline_mode = #tpu.pipeline_mode<synchronous>, transform_indices = @transform_3, window_bounds = array<i64: 10, 10>}, {pipeline_mode = #tpu.pipeline_mode<synchronous>, transform_indices = @transform_4, window_bounds = array<i64: 1, 10>}, {pipeline_mode = #tpu.pipeline_mode<synchronous>, transform_indices = @transform_5, window_bounds = array<i64: 10, 2>}, {pipeline_mode = #tpu.pipeline_mode<synchronous>, transform_indices = @transform_6, window_bounds = array<i64: 1, 2>}, {pipeline_mode = #tpu.pipeline_mode<synchronous>, transform_indices = @transform_7, window_bounds = array<i64: 8, 2>}]} {
    %c0_i32 = arith.constant 0 : i32
    %0 = arith.cmpi eq, %arg0, %c0_i32 : i32
    %1 = arith.extui %0 : i1 to i32
    %c0_i32_0 = arith.constant 0 : i32
    %2 = arith.cmpi ne, %1, %c0_i32_0 : i32
    scf.if %2 {
      %cst_9 = arith.constant 0.000000e+00 : f32
      %12 = vector.broadcast %cst_9 : f32 to vector<8x10xf32>
      %c0_10 = arith.constant 0 : index
      %c0_11 = arith.constant 0 : index
      %13 = vector.load %arg9[%c0_10, %c0_11] : memref<8x10xf32, #tpu.memory_space<vmem>>, vector<8x10xf32>
      tpu.vector_store %arg9[%c0_10, %c0_11], %12 {strides = array<i32>} : memref<8x10xf32, #tpu.memory_space<vmem>>, vector<8x10xf32>,
    } else {
    }
    %c0 = arith.constant 0 : index
    %c0_1 = arith.constant 0 : index
    %3 = vector.load %arg9[%c0, %c0_1] : memref<8x10xf32, #tpu.memory_space<vmem>>, vector<8x10xf32>
    %c0_2 = arith.constant 0 : index
    %c0_3 = arith.constant 0 : index
    %4 = vector.load %arg1[%c0_2, %c0_3] : memref<8x8192xbf16, #tpu.memory_space<vmem>>, vector<8x8192xbf16>
    %c0_4 = arith.constant 0 : index
    %c0_5 = arith.constant 0 : index
    %5 = vector.load %arg2[%c0_4, %c0_5] : memref<10x8192xbf16, #tpu.memory_space<vmem>>, vector<10x8192xbf16>
    %cst = arith.constant dense<0.000000e+00> : vector<8x10xf32>
    %6 = tpu.matmul %4, %5, %cst {dimension_numbers = #tpu.dot_dimension_numbers<[1], [1], [0], [0], [0, 0, 1, 0], [], []>} : vector<8x8192xbf16>, vector<10x8192xbf16>, vector<8x10xf32> -> vector<8x10xf32>
    %7 = arith.addf %3, %6 : vector<8x10xf32>
    %c0_6 = arith.constant 0 : index
    %c0_7 = arith.constant 0 : index
    %8 = vector.load %arg9[%c0_6, %c0_7] : memref<8x10xf32, #tpu.memory_space<vmem>>, vector<8x10xf32>
    tpu.vector_store %arg9[%c0_6, %c0_7], %7 {strides = array<i32>} : memref<8x10xf32, #tpu.memory_space<vmem>>, vector<8x10xf32>,
    %c7_i32 = arith.constant 7 : i32
    %9 = arith.cmpi eq, %arg0, %c7_i32 : i32
    %10 = arith.extui %9 : i1 to i32
    %c0_i32_8 = arith.constant 0 : i32
    %11 = arith.cmpi ne, %10, %c0_i32_8 : i32
    scf.if %11 {
      %c0_9 = arith.constant 0 : index
      %c0_10 = arith.constant 0 : index
      %12 = vector.load %arg9[%c0_9, %c0_10] : memref<8x10xf32, #tpu.memory_space<vmem>>, vector<8x10xf32>
      %c0_11 = arith.constant 0 : index
      %c0_12 = arith.constant 0 : index
      %13 = vector.load %arg3[%c0_11, %c0_12] : memref<1x10xf32, #tpu.memory_space<vmem>>, vector<1x10xf32>
      %14 = vector.broadcast %13 : vector<1x10xf32> to vector<8x10xf32>
      %15 = arith.addf %12, %14 : vector<8x10xf32>
      %cst_13 = arith.constant 0.000000e+00 : f32
      %16 = vector.broadcast %cst_13 : f32 to vector<8x10xf32>
      %17 = arith.maximumf %15, %16 : vector<8x10xf32>
      %c0_14 = arith.constant 0 : index
      %c0_15 = arith.constant 0 : index
      %18 = vector.load %arg4[%c0_14, %c0_15] : memref<10x10xf32, #tpu.memory_space<vmem>>, vector<10x10xf32>
      %cst_16 = arith.constant dense<0.000000e+00> : vector<8x10xf32>
      %19 = tpu.matmul %17, %18, %cst_16 {dimension_numbers = #tpu.dot_dimension_numbers<[1], [0], [0], [1], [0, 0, 1, 1], [], []>} : vector<8x10xf32>, vector<10x10xf32>, vector<8x10xf32> -> vector<8x10xf32>
      %c0_17 = arith.constant 0 : index
      %c0_18 = arith.constant 0 : index
      %20 = vector.load %arg5[%c0_17, %c0_18] : memref<1x10xf32, #tpu.memory_space<vmem>>, vector<1x10xf32>
      %21 = vector.broadcast %20 : vector<1x10xf32> to vector<8x10xf32>
      %22 = arith.addf %19, %21 : vector<8x10xf32>
      %cst_19 = arith.constant 0.000000e+00 : f32
      %23 = vector.broadcast %cst_19 : f32 to vector<8x10xf32>
      %24 = arith.maximumf %22, %23 : vector<8x10xf32>
      %25 = arith.addf %24, %17 : vector<8x10xf32>
      %c0_20 = arith.constant 0 : index
      %c0_21 = arith.constant 0 : index
      %26 = vector.load %arg6[%c0_20, %c0_21] : memref<10x2xf32, #tpu.memory_space<vmem>>, vector<10x2xf32>
      %cst_22 = arith.constant dense<0.000000e+00> : vector<8x2xf32>
      %27 = tpu.matmul %25, %26, %cst_22 {dimension_numbers = #tpu.dot_dimension_numbers<[1], [0], [0], [1], [0, 0, 1, 1], [], []>} : vector<8x10xf32>, vector<10x2xf32>, vector<8x2xf32> -> vector<8x2xf32>
      %c0_23 = arith.constant 0 : index
      %c0_24 = arith.constant 0 : index
      %28 = vector.load %arg7[%c0_23, %c0_24] : memref<1x2xf32, #tpu.memory_space<vmem>>, vector<1x2xf32>
      %29 = vector.broadcast %28 : vector<1x2xf32> to vector<8x2xf32>
      %30 = arith.addf %27, %29 : vector<8x2xf32>
      %c0_25 = arith.constant 0 : index
      %c0_26 = arith.constant 0 : index
      %31 = vector.load %arg8[%c0_25, %c0_26] : memref<8x2xf32, #tpu.memory_space<vmem>>, vector<8x2xf32>
      tpu.vector_store %arg8[%c0_25, %c0_26], %30 {strides = array<i32>} : memref<8x2xf32, #tpu.memory_space<vmem>>, vector<8x2xf32>,
    } else {
    }
    return
  }
  func.func @transform_0(%arg0: i32) -> (i32, i32) {
    %c0_i32 = arith.constant 0 : i32
    %c0_i32_0 = arith.constant 0 : i32
    return %c0_i32, %arg0 : i32, i32
  }
  func.func @transform_1(%arg0: i32) -> (i32, i32) {
    %c0_i32 = arith.constant 0 : i32
    %c0_i32_0 = arith.constant 0 : i32
    return %c0_i32, %arg0 : i32, i32
  }
  func.func @transform_2(%arg0: i32) -> (i32, i32) {
    %c0_i32 = arith.constant 0 : i32
    %c0_i32_0 = arith.constant 0 : i32
    %c0_i32_1 = arith.constant 0 : i32
    return %c0_i32, %c0_i32_0 : i32, i32
  }
  func.func @transform_3(%arg0: i32) -> (i32, i32) {
    %c0_i32 = arith.constant 0 : i32
    %c0_i32_0 = arith.constant 0 : i32
    %c0_i32_1 = arith.constant 0 : i32
    return %c0_i32, %c0_i32_0 : i32, i32
  }
  func.func @transform_4(%arg0: i32) -> (i32, i32) {
    %c0_i32 = arith.constant 0 : i32
    %c0_i32_0 = arith.constant 0 : i32
    %c0_i32_1 = arith.constant 0 : i32
    return %c0_i32, %c0_i32_0 : i32, i32
  }
  func.func @transform_5(%arg0: i32) -> (i32, i32) {
    %c0_i32 = arith.constant 0 : i32
    %c0_i32_0 = arith.constant 0 : i32
    %c0_i32_1 = arith.constant 0 : i32
    return %c0_i32, %c0_i32_0 : i32, i32
  }
  func.func @transform_6(%arg0: i32) -> (i32, i32) {
    %c0_i32 = arith.constant 0 : i32
    %c0_i32_0 = arith.constant 0 : i32
    %c0_i32_1 = arith.constant 0 : i32
    return %c0_i32, %c0_i32_0 : i32, i32
  }
  func.func @transform_7(%arg0: i32) -> (i32, i32) {
    %c0_i32 = arith.constant 0 : i32
    %c0_i32_0 = arith.constant 0 : i32
    %c0_i32_1 = arith.constant 0 : i32
    return %c0_i32, %c0_i32_0 : i32, i32
  }
}

module attributes {stable_mosaic.version = 11 : i64} {
  func.func @_net_fused_kernel(%arg0: i32, %arg1: memref<8x8192xbf16, #tpu.memory_space<vmem>>, %arg2: memref<10x8192xbf16, #tpu.memory_space<vmem>>, %arg3: memref<1x10xf32, #tpu.memory_space<vmem>>, %arg4: memref<10x10xf32, #tpu.memory_space<vmem>>, %arg5: memref<1x10xf32, #tpu.memory_space<vmem>>, %arg6: memref<10x2xf32, #tpu.memory_space<vmem>>, %arg7: memref<1x2xf32, #tpu.memory_space<vmem>>, %arg8: memref<8x2xf32, #tpu.memory_space<vmem>>, %arg9: memref<8x10xf32, #tpu.memory_space<vmem>>) attributes {dimension_semantics = [#tpu.dimension_semantics<arbitrary>], iteration_bounds = array<i64: 8>, scalar_prefetch = 0 : i64, scratch_operands = 1 : i64, tpu.core_type = #tpu.core_type<tc>, window_params = [{transform_indices = @transform_0, window_bounds = array<i64: 8, 8192>}, {transform_indices = @transform_1, window_bounds = array<i64: 10, 8192>}, {pipeline_mode = #tpu.pipeline_mode<synchronous>, transform_indices = @transform_2, window_bounds = array<i64: 1, 10>}, {pipeline_mode = #tpu.pipeline_mode<synchronous>, transform_indices = @transform_3, window_bounds = array<i64: 10, 10>}, {pipeline_mode = #tpu.pipeline_mode<synchronous>, transform_indices = @transform_4, window_bounds = array<i64: 1, 10>}, {pipeline_mode = #tpu.pipeline_mode<synchronous>, transform_indices = @transform_5, window_bounds = array<i64: 10, 2>}, {pipeline_mode = #tpu.pipeline_mode<synchronous>, transform_indices = @transform_6, window_bounds = array<i64: 1, 2>}, {pipeline_mode = #tpu.pipeline_mode<synchronous>, transform_indices = @transform_7, window_bounds = array<i64: 8, 2>}]} {
    %c0_i32 = arith.constant 0 : i32
    %0 = arith.cmpi eq, %arg0, %c0_i32 : i32
    %1 = arith.extui %0 : i1 to i32
    %c0_i32_0 = arith.constant 0 : i32
    %2 = arith.cmpi ne, %1, %c0_i32_0 : i32
    scf.if %2 {
      %cst_9 = arith.constant 0.000000e+00 : f32
      %12 = vector.broadcast %cst_9 : f32 to vector<8x10xf32>
      %c0_10 = arith.constant 0 : index
      %c0_11 = arith.constant 0 : index
      %13 = vector.load %arg9[%c0_10, %c0_11] : memref<8x10xf32, #tpu.memory_space<vmem>>, vector<8x10xf32>
      tpu.vector_store %arg9[%c0_10, %c0_11], %12 {strides = array<i32>} : memref<8x10xf32, #tpu.memory_space<vmem>>, vector<8x10xf32>,
    } else {
    }
    %c0 = arith.constant 0 : index
    %c0_1 = arith.constant 0 : index
    %3 = vector.load %arg9[%c0, %c0_1] : memref<8x10xf32, #tpu.memory_space<vmem>>, vector<8x10xf32>
    %c0_2 = arith.constant 0 : index
    %c0_3 = arith.constant 0 : index
    %4 = vector.load %arg1[%c0_2, %c0_3] : memref<8x8192xbf16, #tpu.memory_space<vmem>>, vector<8x8192xbf16>
    %c0_4 = arith.constant 0 : index
    %c0_5 = arith.constant 0 : index
    %5 = vector.load %arg2[%c0_4, %c0_5] : memref<10x8192xbf16, #tpu.memory_space<vmem>>, vector<10x8192xbf16>
    %cst = arith.constant dense<0.000000e+00> : vector<8x10xf32>
    %6 = tpu.matmul %4, %5, %cst {dimension_numbers = #tpu.dot_dimension_numbers<[1], [1], [0], [0], [0, 0, 1, 0], [], []>} : vector<8x8192xbf16>, vector<10x8192xbf16>, vector<8x10xf32> -> vector<8x10xf32>
    %7 = arith.addf %3, %6 : vector<8x10xf32>
    %c0_6 = arith.constant 0 : index
    %c0_7 = arith.constant 0 : index
    %8 = vector.load %arg9[%c0_6, %c0_7] : memref<8x10xf32, #tpu.memory_space<vmem>>, vector<8x10xf32>
    tpu.vector_store %arg9[%c0_6, %c0_7], %7 {strides = array<i32>} : memref<8x10xf32, #tpu.memory_space<vmem>>, vector<8x10xf32>,
    %c7_i32 = arith.constant 7 : i32
    %9 = arith.cmpi eq, %arg0, %c7_i32 : i32
    %10 = arith.extui %9 : i1 to i32
    %c0_i32_8 = arith.constant 0 : i32
    %11 = arith.cmpi ne, %10, %c0_i32_8 : i32
    scf.if %11 {
      %c0_9 = arith.constant 0 : index
      %c0_10 = arith.constant 0 : index
      %12 = vector.load %arg9[%c0_9, %c0_10] : memref<8x10xf32, #tpu.memory_space<vmem>>, vector<8x10xf32>
      %c0_11 = arith.constant 0 : index
      %c0_12 = arith.constant 0 : index
      %13 = vector.load %arg3[%c0_11, %c0_12] : memref<1x10xf32, #tpu.memory_space<vmem>>, vector<1x10xf32>
      %14 = vector.broadcast %13 : vector<1x10xf32> to vector<8x10xf32>
      %15 = arith.addf %12, %14 : vector<8x10xf32>
      %cst_13 = arith.constant 0.000000e+00 : f32
      %16 = vector.broadcast %cst_13 : f32 to vector<8x10xf32>
      %17 = arith.maximumf %15, %16 : vector<8x10xf32>
      %c0_14 = arith.constant 0 : index
      %c0_15 = arith.constant 0 : index
      %18 = vector.load %arg4[%c0_14, %c0_15] : memref<10x10xf32, #tpu.memory_space<vmem>>, vector<10x10xf32>
      %cst_16 = arith.constant dense<0.000000e+00> : vector<8x10xf32>
      %19 = tpu.matmul %17, %18, %cst_16 {dimension_numbers = #tpu.dot_dimension_numbers<[1], [0], [0], [1], [0, 0, 1, 1], [], []>} : vector<8x10xf32>, vector<10x10xf32>, vector<8x10xf32> -> vector<8x10xf32>
      %c0_17 = arith.constant 0 : index
      %c0_18 = arith.constant 0 : index
      %20 = vector.load %arg5[%c0_17, %c0_18] : memref<1x10xf32, #tpu.memory_space<vmem>>, vector<1x10xf32>
      %21 = vector.broadcast %20 : vector<1x10xf32> to vector<8x10xf32>
      %22 = arith.addf %19, %21 : vector<8x10xf32>
      %cst_19 = arith.constant 0.000000e+00 : f32
      %23 = vector.broadcast %cst_19 : f32 to vector<8x10xf32>
      %24 = arith.maximumf %22, %23 : vector<8x10xf32>
      %25 = arith.addf %24, %17 : vector<8x10xf32>
      %c0_20 = arith.constant 0 : index
      %c0_21 = arith.constant 0 : index
      %26 = vector.load %arg6[%c0_20, %c0_21] : memref<10x2xf32, #tpu.memory_space<vmem>>, vector<10x2xf32>
      %cst_22 = arith.constant dense<0.000000e+00> : vector<8x2xf32>
      %27 = tpu.matmul %25, %26, %cst_22 {dimension_numbers = #tpu.dot_dimension_numbers<[1], [0], [0], [1], [0, 0, 1, 1], [], []>} : vector<8x10xf32>, vector<10x2xf32>, vector<8x2xf32> -> vector<8x2xf32>
      %c0_23 = arith.constant 0 : index
      %c0_24 = arith.constant 0 : index
      %28 = vector.load %arg7[%c0_23, %c0_24] : memref<1x2xf32, #tpu.memory_space<vmem>>, vector<1x2xf32>
      %29 = vector.broadcast %28 : vector<1x2xf32> to vector<8x2xf32>
      %30 = arith.addf %27, %29 : vector<8x2xf32>
      %c0_25 = arith.constant 0 : index
      %c0_26 = arith.constant 0 : index
      %31 = vector.load %arg8[%c0_25, %c0_26] : memref<8x2xf32, #tpu.memory_space<vmem>>, vector<8x2xf32>
      tpu.vector_store %arg8[%c0_25, %c0_26], %30 {strides = array<i32>} : memref<8x2xf32, #tpu.memory_space<vmem>>, vector<8x2xf32>,
    } else {
    }
    return
  }
  func.func @transform_0(%arg0: i32) -> (i32, i32) {
    %c0_i32 = arith.constant 0 : i32
    %c0_i32_0 = arith.constant 0 : i32
    return %c0_i32, %arg0 : i32, i32
  }
  func.func @transform_1(%arg0: i32) -> (i32, i32) {
    %c0_i32 = arith.constant 0 : i32
    %c0_i32_0 = arith.constant 0 : i32
    return %c0_i32, %arg0 : i32, i32
  }
  func.func @transform_2(%arg0: i32) -> (i32, i32) {
    %c0_i32 = arith.constant 0 : i32
    %c0_i32_0 = arith.constant 0 : i32
    %c0_i32_1 = arith.constant 0 : i32
    return %c0_i32, %c0_i32_0 : i32, i32
  }
  func.func @transform_3(%arg0: i32) -> (i32, i32) {
    %c0_i32 = arith.constant 0 : i32
    %c0_i32_0 = arith.constant 0 : i32
    %c0_i32_1 = arith.constant 0 : i32
    return %c0_i32, %c0_i32_0 : i32, i32
  }
  func.func @transform_4(%arg0: i32) -> (i32, i32) {
    %c0_i32 = arith.constant 0 : i32
    %c0_i32_0 = arith.constant 0 : i32
    %c0_i32_1 = arith.constant 0 : i32
    return %c0_i32, %c0_i32_0 : i32, i32
  }
  func.func @transform_5(%arg0: i32) -> (i32, i32) {
    %c0_i32 = arith.constant 0 : i32
    %c0_i32_0 = arith.constant 0 : i32
    %c0_i32_1 = arith.constant 0 : i32
    return %c0_i32, %c0_i32_0 : i32, i32
  }
  func.func @transform_6(%arg0: i32) -> (i32, i32) {
    %c0_i32 = arith.constant 0 : i32
    %c0_i32_0 = arith.constant 0 : i32
    %c0_i32_1 = arith.constant 0 : i32
    return %c0_i32, %c0_i32_0 : i32, i32
  }
  func.func @transform_7(%arg0: i32) -> (i32, i32) {
    %c0_i32 = arith.constant 0 : i32
    %c0_i32_0 = arith.constant 0 : i32
    %c0_i32_1 = arith.constant 0 : i32
    return %c0_i32, %c0_i32_0 : i32, i32
  }
}

</mosaic_0001>

<bundles_post_ra>
// kernel: net_forward.1
= control target key start
LH: loop header
LB: loop body
LE: loop exit
PB: predicated region body
PF: predicated region fallthrough
CT: control target
= control target key end

     0   :  { %s3117_s0 = inlined_call_operand.hbm [shape: bf16[8,65536], index: 0, kind: input, shape index: {}]   ;;  %s3118_s1 = inlined_call_operand.hbm [shape: bf16[10,65536], index: 1, kind: input, shape index: {}]   ;;  %s3119_s2 = inlined_call_operand.hbm [shape: f32[1,10], index: 2, kind: input, shape index: {}]   ;;  %s3120_s3 = inlined_call_operand.hbm [shape: f32[10,10], index: 3, kind: input, shape index: {}]   ;;  %s3121_s4 = inlined_call_operand.hbm [shape: f32[1,10], index: 4, kind: input, shape index: {}]   ;;  %s3122_s5 = inlined_call_operand.vmem [shape: f32[10,2], index: 5, kind: input, shape index: {}]   ;;  %s3123_s6 = inlined_call_operand.hbm [shape: f32[1,2], index: 6, kind: input, shape index: {}]   ;;  %s3124_s7 = inlined_call_operand.vmem [shape: f32[8,2], index: 7, kind: output, shape index: {}]  }
   0x1   :  { %3125 = sst [smem:[#allocation18_spill]] %s3119_s2 }
   0x2   :  { %3126 = sst [smem:[#allocation19_spill]] %s3120_s3 }
   0x3   :  { %3127 = sst [smem:[#allocation20_spill]] %s3121_s4 }
   0x4   :  { %12 = vsyncpa [#allocation4], 0 }
   0x5   :  { %14 = vsyncpa [#allocation4 + $0x1], 0 }
   0x6   :  { %15 = vsyncpa [#allocation6], 0 }
   0x7   :  { %17 = vsyncpa [#allocation6 + $0x1], 0 }
   0x8   :  { %18 = vsyncpa [#allocation9], 0 }
   0x9   :  { %19 = vsyncpa [#allocation12], 0  ;;  %s2777_s24 = smov 0   ;;  %s2779_s25 = smov 0  }
   0xa   :  { %s2781_s26 = smov 0   ;;  %s2783_s27 = smov 0  }
   0xb LB: > { %s3128_s2 = sld [smem:[#allocation18_spill]]  ;;  %s2801_s8 = sadd.s32 4294967295, %s2725_s27   ;;  %s2725_s27 = sphi %s2783_s27, %s3138_s27   ;;  %s2721_s26 = sphi %s2781_s26, %s3137_s26   ;;  %s2717_s25 = sphi %s2779_s25, %s3136_s25   ;;  %s2713_s24 = sphi %s2777_s24, %s3135_s24  }
   0xc   : > { %p2052_p0 = scmp.ge.s32.totalorder %s2725_s27, 1  ;;  %p46_p1 = scmp.eq.s32.totalorder %s2801_s8, 0 }
   0xd   : > { %p208_p2 = scmp.lt.s32.totalorder %s2725_s27, 9  ;;  %p2053_p3 = scmp.ne.s32.totalorder %s2801_s8, 0 }
   0xe   : > { %s2727_s10 = smov [#allocation7]   ;;  %s3130_s3 = sld [smem:[#allocation19_spill]] }
   0xf   : > { %p2807_p4 = pnand %p2052_p0, %p208_p2  ;;  %s222_s11 = sshll.u32 %s2727_s10, 4  ;;  %s223_s11 = int_to_ptr.vmem [resolvable:$true] %s222_s11 }
  0x10   : > { %s2728_s16 = smov [#allocation8]   ;;  %s2729_s18 = smov 128  }
  0x11   : > { %s220_s30 = sshll.u32 %s3128_s2, 4  ;;  %p2421_p5 = pneg %p2807_p4  ;;  %s221_s30 = int_to_ptr.hbm [resolvable:$true] %s220_s30 }
  0x12   : > { %s233_s17 = sshll.u32 %s2728_s16, 4  ;;  %s2730_s19 = smov 8   ;;  %s234_s17 = int_to_ptr.vmem [resolvable:$true] %s233_s17 }
  0x13   : > { %p2818_p6 = pnand %p2421_p5, %p46_p1  ;;  %s3132_s4 = sld [smem:[#allocation20_spill]] }
  0x14   : > { %s231_s14 = sshll.u32 %s3130_s3, 4  ;;  %s2731_s23 = smov [#allocation10]   ;;  %s232_s14 = int_to_ptr.hbm [resolvable:$true] %s231_s14 }
  0x15   : > { %2424 = dma.hbm_to_vmem [thread:$0]  (!%p2818_p6), %s221_s30, 16, %s223_s11, [#allocation6]  }
  0x16   : > { %2427 = dma.hbm_to_vmem [thread:$0]  (!%p2818_p6), %s232_s14, 256, %s234_s17, [#allocation9], %s2729_s18, %s2729_s18, %s2730_s19  }
  0x17   : > { %s248_s28 = sshll.u32 %s2731_s23, 4  ;;  %s261_s10 = sshll.u32 %s3123_s6, 4  ;;  %s249_s28 = int_to_ptr.vmem [resolvable:$true] %s248_s28  ;;  %s262_s10 = int_to_ptr.hbm [resolvable:$true] %s261_s10 }
  0x18   : > { %s2732_s11 = smov [#allocation11]   ;;  %s2837_s13 = sadd.s32 1, %s2725_s27  }
  0x19   : > { %s246_s22 = sshll.u32 %s3132_s4, 4  ;;  %s263_s12 = sshll.u32 %s2732_s11, 4  ;;  %s247_s22 = int_to_ptr.hbm [resolvable:$true] %s246_s22  ;;  %s264_s12 = int_to_ptr.vmem [resolvable:$true] %s263_s12 }
  0x1a   : > { %2430 = dma.hbm_to_vmem [thread:$0]  (!%p2818_p6), %s247_s22, 16, %s249_s28, [#allocation9]  }
  0x1b   : > { %2433 = dma.hbm_to_vmem [thread:$0]  (!%p2818_p6), %s262_s10, 16, %s264_s12, [#allocation12]  }
  0x1c   : > { %s32_s14 = sadd.s32 1, %s2721_s26  ;;  %s29_s16 = ssub.s32 %s2725_s27, %s2837_s13 }
  0x1d   : > { %p39_p7 = scmp.ne.s32.totalorder %s2721_s26, %s2717_s25  ;;  %p30_p8 = scmp.eq.s32.totalorder %s29_s16, 0 }
  0x1e   : > { %p40_p9 = scmp.eq.s32.totalorder %s2725_s27, 0  ;;  %p45_p10 = scmp.ne.s32.totalorder %s2717_s25, %s2713_s24 }
  0x1f   : > { %p2445_p11 = scmp.lt.s32.totalorder %s2725_s27, 8  ;;  %s2858_s15 = sand.u32 1, %s2721_s26  }
  0x20   : > { %s2849_s17 = scalar_select %p30_p8, %s2721_s26, %s32_s14  }
  0x21   : > { %p41_p12 = por %p40_p9, %p39_p7  ;;  %p2853_p13 = por %p46_p1, %p45_p10 }
  0x22   : > { %s2335_s19 = sshll.u32 %s2725_s27, 8  ;;  %s2058_s20 = sshll.u32 %s2858_s15, 8 }
  0x23   : > { %s283_s24 = scalar_lea.hbm %s3117_s0, %s2335_s19  ;;  %s278_s28 = scalar_lea.vmem [#allocation3], %s2058_s20 }
  0x24   : > { %s285_s23 = sshll.u32 %s283_s24, 4  ;;  %s287_s29 = sshll.u32 %s278_s28, 4  ;;  %s286_s23 = int_to_ptr.hbm [resolvable:$true] %s285_s23  ;;  %s288_s29 = int_to_ptr.vmem [resolvable:$true] %s287_s29 }
  0x25   : > { %p2867_p0 = pnand %p2445_p11, %p41_p12  ;;  %s2061_s10 = sshll.u32 %s2858_s15, 9 }
  0x26   : > { %s303_s14 = scalar_lea.hbm %s3118_s1, %s2335_s19  ;;  %s275_s21 = scalar_lea.sflag [#allocation4], %s2858_s15 }
  0x27   : > { %s304_s16 = sshll.u32 %s303_s14, 4  ;;  %s2615_s22 = sshra.s32 %s286_s23, 4  ;;  %s2616_s22 = int_to_ptr.hbm [resolvable:$true] %s2615_s22  ;;  %s305_s16 = int_to_ptr.hbm [resolvable:$true] %s304_s16 }
  0x28   : > { %s2617_s20 = scalar_lea.hbm %s2616_s22, 256  ;;  %p2619_p5 = pneg %p2867_p0 }
  0x29   : > { %p2618_p2 = scmp.ne.s32.totalorder %s2616_s22, %s2617_s20  ;;  %s2622_s2 = scalar_lea.hbm %s3117_s0, 2048 }
  0x2a   : > { %p2623_p8 = scmp.lt.s32.totalorder %s2616_s22, %s3117_s0  ;;  %p2624_p9 = scmp.lt.s32.totalorder %s2622_s2, %s2617_s20 }
  0x2b   : > { %p2620_p6 = pnand %p2619_p5, %p2618_p2 }
  0x2c   : > { %p2625_p10 = por %p2624_p9, %p2623_p8 }
  0x2d   : > { %p2621_p7 = pneg %p2620_p6 }
  0x2f   : > { %p2626_p11 = pnand %p2625_p10, %p2621_p7 }
  0x31   : > { %2629 = shalt.err (!%p2626_p11)
}
  0x32   : > { %2437 = dma.hbm_to_vmem [thread:$0]  (!%p2867_p0), %s286_s23, 4096, %s288_s29, %s275_s21  }
  0x33   : > { %s298_s15 = scalar_lea.vmem [#allocation5], %s2061_s10  ;;  %s294_s11 = sand.u32 1, %s2725_s27  }
  0x34   : > { %s306_s19 = sshll.u32 %s298_s15, 4  ;;  %s295_s12 = scalar_lea.sflag [#allocation6], %s294_s11  ;;  %s307_s19 = int_to_ptr.vmem [resolvable:$true] %s306_s19 }
  0x35   : > { %s2645_s14 = sshra.s32 %s305_s16, 4  ;;  %s2652_s4 = scalar_lea.hbm %s3118_s1, 4096  ;;  %s2646_s14 = int_to_ptr.hbm [resolvable:$true] %s2645_s14 }
  0x36   : > { %s2647_s24 = scalar_lea.hbm %s2646_s14, 512  ;;  %p2653_p7 = scmp.lt.s32.totalorder %s2646_s14, %s3118_s1 }
  0x37   : > { %p2648_p12 = scmp.ne.s32.totalorder %s2646_s14, %s2647_s24  ;;  %p2654_p8 = scmp.lt.s32.totalorder %s2652_s4, %s2647_s24 }
  0x39   : > { %p2650_p2 = pnand %p2648_p12, %p2619_p5  ;;  %p2655_p9 = por %p2654_p8, %p2653_p7 }
  0x3b   : > { %p2651_p6 = pneg %p2650_p2 }
  0x3d   : > { %p2656_p10 = pnand %p2655_p9, %p2651_p6 }
  0x3f   : > { %2659 = shalt.err (!%p2656_p10)
}
  0x40   : > { %s2733_s27 = smov 32768   ;;  %s2734_s29 = smov 4096  }
  0x41   : > { %s2735_s10 = smov 256   ;;  %318 = sbr.rel (%p2807_p4) target bundleno = 752 (0x2f0), region = 48 }
  0x42   : > { %2440 = dma.hbm_to_vmem [thread:$0]  (!%p2867_p0), %s305_s16, 8192, %s307_s19, %s295_s12, %s2733_s27, %s2734_s29, %s2735_s10  }
  0x43   : > { %s320_s21 = sand.u32 (!%p2807_p4), 1, %s2717_s25  }
  0x44   : > { %s2065_s20 = sshll.u32 (!%p2807_p4), %s320_s21, 8  ;;  %s321_s28 = scalar_lea.sflag (!%p2807_p4), [#allocation4], %s320_s21 }
  0x45   : > { %s2904_s15 = scalar_lea.vmem (!%p2807_p4), [#allocation3], %s2065_s20 }
  0x46   : > { %2692 = dma.done.wait (%p2853_p13), %s321_s28, 4096  }
  0x47   : > { %2694 = vsyncadd (%p2853_p13), %s321_s28, 4294963200  ;;  %s330_s11 = sand.u32 1, %s2801_s8   ;;  %s2066_s30 = sshll.u32 %s320_s21, 9 }
  0x48   : > { %s331_s16 = scalar_lea.sflag [#allocation6], %s330_s11  ;;  %s2911_s19 = scalar_lea.vmem [#allocation5], %s2066_s30 }
  0x49   : > { %2696 = dma.done.wait (%p2853_p13), %s331_s16, 8192  }
  0x4a   : > { %2698 = vsyncadd (%p2853_p13), %s331_s16, 4294959104 }
  0x4b   : > { %2700 = dma.done.wait (%p46_p1), [#allocation6], 16  }
  0x4c   : > { %2702 = vsyncadd (%p46_p1), [#allocation6], 4294967280 }
  0x4d   : > { %2704 = dma.done.wait (%p46_p1), [#allocation9], 272  }
  0x4e   : > { %2706 = vsyncadd (%p46_p1), [#allocation9], 4294967024 }
  0x4f   : > { %2708 = dma.done.wait (%p46_p1), [#allocation12], 16  }
  0x50   : > { %2710 = vsyncadd (%p46_p1), [#allocation12], 4294967280  ;;  %392 = sbr.rel (%p2053_p3) target bundleno = 87 (0x57), region = 76 }
  0x55   : > { %vm393_vm0 = vcmask 80896   ;;  %v2736_v0 = vmov 0.0  }
  0x56   : > { %394 = vst.msk [vmem:[#allocation2] sm:$0xff] %vm393_vm0, %v2736_v0 }
  0x57 PF: > { %v2074_v1 = vld [vmem:[%s2911_s19] sm:$0xf]  ;;  %v2337_v3 = vld [vmem:[%s2911_s19 + $0x4] sm:$0xf]  ;;  %v2082_v6 = vld [vmem:[%s2911_s19 + $0x8] sm:$0xf] }
  0x58   : > { %v2369_v2 = vld [vmem:[%s2911_s19 + $0xfc] sm:$0x10]  ;;  %v2076_v5 = vld [vmem:[%s2911_s19 + $0x100] sm:$0x10]  ;;  %v2370_v7 = vld [vmem:[%s2911_s19 + $0x104] sm:$0x10] }
  0x59   : > { %v2075_v4 = vor.u32 %v2369_v2, %v2074_v1  ;;  %v2079_v8 = vor.u32 %v2337_v3, %v2076_v5  ;;  %v2083_v9 = vor.u32 %v2370_v7, %v2082_v6  ;;  %v2338_v10 = vld [vmem:[%s2911_s19 + $0xc] sm:$0xf]  ;;  %v396_v12 = vld [vmem:[%s2904_s15] sm:$0xff]  ;;  %v2098_v17 = vld [vmem:[%s2911_s19 + $0x18] sm:$0xf]  ;;  %vm1869_vm1 = vcmask 80896  }
  0x5a   : > { %v2084_v11 = vld [vmem:[%s2911_s19 + $0x108] sm:$0x10]  ;;  %v524_v14 = vunpack.c.l.b16 %v396_v12  ;;  %v525_v15 = vunpack.c.h.b16 %v396_v12  ;;  %v2372_v18 = vld [vmem:[%s2911_s19 + $0x114] sm:$0x10]  ;;  %v2340_v22 = vld [vmem:[%s2911_s19 + $0x1c] sm:$0xf] }
  0x5b   : > { %1043 = vmatpush.bf16.xpose.msra.mxu0 %v2075_v4  ;;  %v2087_v13 = vor.u32 %v2338_v10, %v2084_v11  ;;  %v397_v16 = vld [vmem:[%s2904_s15 + $0x8] sm:$0xff]  ;;  %1056 = vmatpush.bf16.xpose.msra.mxu1 %v2079_v8  ;;  %v2099_v21 = vor.u32 %v2372_v18, %v2098_v17  ;;  %v2100_v23 = vld [vmem:[%s2911_s19 + $0x118] sm:$0x10]  ;;  %v2090_v24 = vld [vmem:[%s2911_s19 + $0x10] sm:$0xf]  ;;  %p2328_p1 = scmp.ne.s32.totalorder %s2801_s8, 7 }
  0x5c   : > { %1069 = vmatpush.bf16.xpose.msra.mxu2 %v2083_v9  ;;  %v526_v19 = vunpack.c.l.b16 %v397_v16  ;;  %v527_v20 = vunpack.c.h.b16 %v397_v16  ;;  %v2103_v25 = vor.u32 %v2340_v22, %v2100_v23  ;;  %v2371_v26 = vld [vmem:[%s2911_s19 + $0x10c] sm:$0x10]  ;;  %v2339_v27 = vld [vmem:[%s2911_s19 + $0x14] sm:$0xf]  ;;  %v588_v29 = vpack.c.b16 %v524_v14, %v524_v14  ;;  %v2114_v32 = vld [vmem:[%s2911_s19 + $0x28] sm:$0xf] }
  0x5d   : > { %1082 = vmatpush.bf16.xpose.msra.mxu3 %v2087_v13  ;;  %v2092_v28 = vld [vmem:[%s2911_s19 + $0x110] sm:$0x10]  ;;  %v2091_v30 = vor.u32 %v2371_v26, %v2090_v24  ;;  %v589_v33 = vpack.c.b16 %v525_v15, %v525_v15  ;;  %v2374_v35 = vld [vmem:[%s2911_s19 + $0x124] sm:$0x10]  ;;  %v2342_v36 = vld [vmem:[%s2911_s19 + $0x2c] sm:$0xf] }
  0x5e   : > { %v2095_v31 = vor.u32 %v2339_v27, %v2092_v28  ;;  %v590_v34 = vpack.c.b16 %v526_v19, %v526_v19  ;;  %v2116_v37 = vld [vmem:[%s2911_s19 + $0x128] sm:$0x10]  ;;  %v591_v38 = vpack.c.b16 %v527_v20, %v527_v20  ;;  %v2115_v39 = vor.u32 %v2374_v35, %v2114_v32  ;;  %v2106_v40 = vld [vmem:[%s2911_s19 + $0x20] sm:$0xf]  ;;  %v2341_v42 = vld [vmem:[%s2911_s19 + $0x24] sm:$0xf] }
  0x5f   : > { %v2373_v41 = vld [vmem:[%s2911_s19 + $0x11c] sm:$0x10]  ;;  %v2119_v43 = vor.u32 %v2342_v36, %v2116_v37  ;;  %v2108_v44 = vld [vmem:[%s2911_s19 + $0x120] sm:$0x10]  ;;  %v398_v47 = vld [vmem:[%s2904_s15 + $0x10] sm:$0xff] }
  0x60   : > { %v2107_v45 = vor.u32 %v2373_v41, %v2106_v40  ;;  %v2111_v46 = vor.u32 %v2341_v42, %v2108_v44  ;;  %v399_v48 = vld [vmem:[%s2904_s15 + $0x18] sm:$0xff]  ;;  %v528_v49 = vunpack.c.l.b16 %v398_v47  ;;  %v529_v50 = vunpack.c.h.b16 %v398_v47  ;;  %v2122_v58 = vld [vmem:[%s2911_s19 + $0x30] sm:$0xf]  ;;  %v2343_v62 = vld [vmem:[%s2911_s19 + $0x34] sm:$0xf] }
  0x61   : > { %v530_v51 = vunpack.c.l.b16 %v399_v48  ;;  %v531_v52 = vunpack.c.h.b16 %v399_v48  ;;  %v2130_v53 = vld [vmem:[%s2911_s19 + $0x38] sm:$0xf]  ;;  %v2344_v55 = vld [vmem:[%s2911_s19 + $0x3c] sm:$0xf]  ;;  %v2375_v59 = vld [vmem:[%s2911_s19 + $0x12c] sm:$0x10] }
  0x62   : > { %1044 = vmatmul.bf16.vlgmr.msra.gmra.mxu0 %v588_v29  ;;  %1057 = vmatmul.bf16.vlgmr.msra.gmra.mxu1 %v589_v33  ;;  %v2376_v54 = vld [vmem:[%s2911_s19 + $0x134] sm:$0x10]  ;;  %v592_v56 = vpack.c.b16 %v528_v49, %v528_v49  ;;  %v2132_v57 = vld [vmem:[%s2911_s19 + $0x138] sm:$0x10]  ;;  %v593_v60 = vpack.c.b16 %v529_v50, %v529_v50  ;;  %v2124_v63 = vld [vmem:[%s2911_s19 + $0x130] sm:$0x10]  ;;  %v2123_v3 = vor.u32 %v2375_v59, %v2122_v58 }
  0x63   : > { %1095 = vmatpush.bf16.xpose.msrb.mxu0 %v2091_v30  ;;  %1108 = vmatpush.bf16.xpose.msrb.mxu1 %v2095_v31  ;;  %v594_v61 = vpack.c.b16 %v530_v51, %v530_v51  ;;  %v595_v0 = vpack.c.b16 %v531_v52, %v531_v52  ;;  %v2131_v1 = vor.u32 %v2376_v54, %v2130_v53  ;;  %v400_v5 = vld [vmem:[%s2904_s15 + $0x20] sm:$0xff]  ;;  %v401_v6 = vld [vmem:[%s2904_s15 + $0x28] sm:$0xff]  ;;  %v402_v27 = vld [vmem:[%s2904_s15 + $0x30] sm:$0xff] }
  0x64   : > { %1121 = vmatpush.bf16.xpose.msrb.mxu2 %v2099_v21  ;;  %1083 = vmatmul.bf16.vlgmr.msra.gmra.mxu3 %v591_v38  ;;  %v2135_v2 = vor.u32 %v2344_v55, %v2132_v57  ;;  %v2127_v4 = vor.u32 %v2343_v62, %v2124_v63  ;;  %v532_v7 = vunpack.c.l.b16 %v400_v5  ;;  %v533_v8 = vunpack.c.h.b16 %v400_v5  ;;  %v2146_v11 = vld [vmem:[%s2911_s19 + $0x48] sm:$0xf]  ;;  %v2346_v13 = vld [vmem:[%s2911_s19 + $0x4c] sm:$0xf]  ;;  %v2138_v16 = vld [vmem:[%s2911_s19 + $0x40] sm:$0xf] }
  0x65   : > { %1134 = vmatpush.bf16.xpose.msrb.mxu3 %v2103_v25  ;;  %1070 = vmatmul.bf16.vlgmr.msra.gmra.mxu2 %v590_v34  ;;  %v534_v9 = vunpack.c.l.b16 %v401_v6  ;;  %v535_v10 = vunpack.c.h.b16 %v401_v6  ;;  %v2378_v12 = vld [vmem:[%s2911_s19 + $0x144] sm:$0x10]  ;;  %v2148_v15 = vld [vmem:[%s2911_s19 + $0x148] sm:$0x10]  ;;  %v2377_v17 = vld [vmem:[%s2911_s19 + $0x13c] sm:$0x10]  ;;  %v536_v29 = vunpack.c.l.b16 %v402_v27  ;;  %v537_v30 = vunpack.c.h.b16 %v402_v27 }
  0x66   : > { %v596_v14 = vpack.c.b16 %v532_v7, %v532_v7  ;;  %v597_v18 = vpack.c.b16 %v533_v8, %v533_v8  ;;  %v2345_v20 = vld [vmem:[%s2911_s19 + $0x44] sm:$0xf]  ;;  %v2147_v23 = vor.u32 %v2378_v12, %v2146_v11  ;;  %v2151_v24 = vor.u32 %v2346_v13, %v2148_v15  ;;  %v403_v28 = vld [vmem:[%s2904_s15 + $0x38] sm:$0xff]  ;;  %v2154_v38 = vld [vmem:[%s2911_s19 + $0x50] sm:$0xf] }
  0x67   : > { %v598_v19 = vpack.c.b16 %v534_v9, %v534_v9  ;;  %v2140_v21 = vld [vmem:[%s2911_s19 + $0x140] sm:$0x10]  ;;  %v599_v22 = vpack.c.b16 %v535_v10, %v535_v10  ;;  %v2139_v25 = vor.u32 %v2377_v17, %v2138_v16  ;;  %v538_v31 = vunpack.c.l.b16 %v403_v28  ;;  %v2162_v33 = vld [vmem:[%s2911_s19 + $0x58] sm:$0xf]  ;;  %v2348_v35 = vld [vmem:[%s2911_s19 + $0x5c] sm:$0xf] }
  0x68   : > { %v2143_v26 = vor.u32 %v2345_v20, %v2140_v21  ;;  %v539_v32 = vunpack.c.h.b16 %v403_v28  ;;  %v2380_v34 = vld [vmem:[%s2911_s19 + $0x154] sm:$0x10]  ;;  %v600_v36 = vpack.c.b16 %v536_v29, %v536_v29  ;;  %v2164_v37 = vld [vmem:[%s2911_s19 + $0x158] sm:$0x10]  ;;  %v601_v40 = vpack.c.b16 %v537_v30, %v537_v30  ;;  %v2347_v42 = vld [vmem:[%s2911_s19 + $0x54] sm:$0xf] }
  0x69   : > { %v602_v41 = vpack.c.b16 %v538_v31, %v538_v31  ;;  %v404_v49 = vld [vmem:[%s2904_s15 + $0x40] sm:$0xff]  ;;  %v405_v50 = vld [vmem:[%s2904_s15 + $0x48] sm:$0xff]  ;;  %v406_v7 = vld [vmem:[%s2904_s15 + $0x50] sm:$0xff] }
  0x6a   : > { %v603_v44 = vpack.c.b16 %v539_v32, %v539_v32  ;;  %v540_v51 = vunpack.c.l.b16 %v404_v49  ;;  %v541_v52 = vunpack.c.h.b16 %v404_v49  ;;  %v542_v53 = vunpack.c.l.b16 %v405_v50  ;;  %v2178_v55 = vld [vmem:[%s2911_s19 + $0x68] sm:$0xf]  ;;  %v2350_v57 = vld [vmem:[%s2911_s19 + $0x6c] sm:$0xf]  ;;  %v407_v8 = vld [vmem:[%s2904_s15 + $0x58] sm:$0xff] }
  0x6b   : > { %1147 = vmatpush.bf16.xpose.msra.mxu0 %v2107_v45  ;;  %1160 = vmatpush.bf16.xpose.msra.mxu1 %v2111_v46  ;;  %v2163_v45 = vor.u32 %v2380_v34, %v2162_v33  ;;  %v2167_v46 = vor.u32 %v2348_v35, %v2164_v37  ;;  %v543_v54 = vunpack.c.h.b16 %v405_v50  ;;  %v2180_v59 = vld [vmem:[%s2911_s19 + $0x168] sm:$0x10]  ;;  %v544_v9 = vunpack.c.l.b16 %v406_v7  ;;  %v2194_v13 = vld [vmem:[%s2911_s19 + $0x78] sm:$0xf]  ;;  %v2352_v15 = vld [vmem:[%s2911_s19 + $0x7c] sm:$0xf] }
  0x6c   : > { %1173 = vmatpush.bf16.xpose.msra.mxu2 %v2115_v39  ;;  %v2379_v39 = vld [vmem:[%s2911_s19 + $0x14c] sm:$0x10]  ;;  %v604_v58 = vpack.c.b16 %v540_v51, %v540_v51  ;;  %v605_v62 = vpack.c.b16 %v541_v52, %v541_v52  ;;  %v606_v63 = vpack.c.b16 %v542_v53, %v542_v53  ;;  %v545_v10 = vunpack.c.h.b16 %v406_v7  ;;  %v2196_v17 = vld [vmem:[%s2911_s19 + $0x178] sm:$0x10]  ;;  %v408_v29 = vld [vmem:[%s2904_s15 + $0x60] sm:$0xff] }
  0x6d   : > { %1186 = vmatpush.bf16.xpose.msra.mxu3 %v2119_v43  ;;  %v2156_v43 = vld [vmem:[%s2911_s19 + $0x150] sm:$0x10]  ;;  %v2155_v47 = vor.u32 %v2379_v39, %v2154_v38  ;;  %v546_v11 = vunpack.c.l.b16 %v407_v8  ;;  %v547_v12 = vunpack.c.h.b16 %v407_v8  ;;  %v608_v16 = vpack.c.b16 %v544_v9, %v544_v9  ;;  %v409_v30 = vld [vmem:[%s2904_s15 + $0x68] sm:$0xff]  ;;  %v411_v52 = vld [vmem:[%s2904_s15 + $0x78] sm:$0xff] }
  0x6e   : > { %v2159_v48 = vor.u32 %v2347_v42, %v2156_v43  ;;  %v609_v20 = vpack.c.b16 %v545_v10, %v545_v10  ;;  %v548_v31 = vunpack.c.l.b16 %v408_v29  ;;  %v549_v32 = vunpack.c.h.b16 %v408_v29  ;;  %v2210_v35 = vld [vmem:[%s2911_s19 + $0x88] sm:$0xf]  ;;  %v2354_v37 = vld [vmem:[%s2911_s19 + $0x8c] sm:$0xf]  ;;  %v410_v51 = vld [vmem:[%s2904_s15 + $0x70] sm:$0xff] }
  0x6f   : > { %v610_v21 = vpack.c.b16 %v546_v11, %v546_v11  ;;  %v550_v33 = vunpack.c.l.b16 %v409_v30  ;;  %v551_v34 = vunpack.c.h.b16 %v409_v30  ;;  %v2212_v39 = vld [vmem:[%s2911_s19 + $0x188] sm:$0x10]  ;;  %v552_v53 = vunpack.c.l.b16 %v410_v51  ;;  %v412_v9 = vld [vmem:[%s2904_s15 + $0x80] sm:$0xff] }
  0x70   : > { %v612_v38 = vpack.c.b16 %v548_v31, %v548_v31  ;;  %v613_v42 = vpack.c.b16 %v549_v32, %v549_v32  ;;  %v413_v10 = vld [vmem:[%s2904_s15 + $0x88] sm:$0xff]  ;;  %v556_v11 = vunpack.c.l.b16 %v412_v9 }
  0x71   : > { %v614_v43 = vpack.c.b16 %v550_v33, %v550_v33 }
  0x72   : > { %1096 = vmatmul.bf16.vlgmr.msrb.gmra.mxu0 %v592_v56  ;;  %1109 = vmatmul.bf16.vlgmr.msrb.gmra.mxu1 %v593_v60  ;;  %v2382_v56 = vld [vmem:[%s2911_s19 + $0x164] sm:$0x10]  ;;  %v2170_v60 = vld [vmem:[%s2911_s19 + $0x60] sm:$0xf] }
  0x73   : > { %1199 = vmatpush.bf16.xpose.msrb.mxu0 %v2123_v3  ;;  %1212 = vmatpush.bf16.xpose.msrb.mxu1 %v2127_v4  ;;  %v2179_v3 = vor.u32 %v2382_v56, %v2178_v55  ;;  %v2183_v4 = vor.u32 %v2350_v57, %v2180_v59  ;;  %v554_v55 = vunpack.c.l.b16 %v411_v52  ;;  %v555_v56 = vunpack.c.h.b16 %v411_v52  ;;  %v2226_v57 = vld [vmem:[%s2911_s19 + $0x98] sm:$0xf]  ;;  %v2356_v59 = vld [vmem:[%s2911_s19 + $0x9c] sm:$0xf]  ;;  %v2250_v52 = vld [vmem:[%s2911_s19 + $0xb0] sm:$0xf] }
  0x74   : > { %1135 = vmatmul.bf16.vlgmr.msrb.gmra.mxu3 %v595_v0  ;;  %v2349_v0 = vld [vmem:[%s2911_s19 + $0x64] sm:$0xf] }
  0x75   : > { %1122 = vmatmul.bf16.vlgmr.msrb.gmra.mxu2 %v594_v61  ;;  %1238 = vmatpush.bf16.xpose.msrb.mxu3 %v2135_v2  ;;  %v2381_v61 = vld [vmem:[%s2911_s19 + $0x15c] sm:$0x10]  ;;  %v607_v2 = vpack.c.b16 %v543_v54, %v543_v54  ;;  %v553_v54 = vunpack.c.h.b16 %v410_v51  ;;  %v2260_v51 = vld [vmem:[%s2911_s19 + $0x1b8] sm:$0x10] }
  0x76   : > { %1225 = vmatpush.bf16.xpose.msrb.mxu2 %v2131_v1  ;;  %v2172_v1 = vld [vmem:[%s2911_s19 + $0x160] sm:$0x10]  ;;  %v2171_v5 = vor.u32 %v2381_v61, %v2170_v60  ;;  %v616_v60 = vpack.c.b16 %v552_v53, %v552_v53  ;;  %v2228_v61 = vld [vmem:[%s2911_s19 + $0x198] sm:$0x10]  ;;  %v2391_v53 = vld [vmem:[%s2911_s19 + $0x1ac] sm:$0x10] }
  0x77   : > { %v2175_v6 = vor.u32 %v2349_v0, %v2172_v1  ;;  %v617_v0 = vpack.c.b16 %v553_v54, %v553_v54  ;;  %v618_v1 = vpack.c.b16 %v554_v55, %v554_v55 }
  0x82   : > { %1148 = vmatmul.bf16.vlgmr.msra.gmra.mxu0 %v596_v14  ;;  %1161 = vmatmul.bf16.vlgmr.msra.gmra.mxu1 %v597_v18  ;;  %v2384_v14 = vld [vmem:[%s2911_s19 + $0x174] sm:$0x10]  ;;  %v2186_v18 = vld [vmem:[%s2911_s19 + $0x70] sm:$0xf] }
  0x83   : > { %1251 = vmatpush.bf16.xpose.msra.mxu0 %v2139_v25  ;;  %1264 = vmatpush.bf16.xpose.msra.mxu1 %v2143_v26  ;;  %v2195_v25 = vor.u32 %v2384_v14, %v2194_v13  ;;  %v2199_v26 = vor.u32 %v2352_v15, %v2196_v17  ;;  %v558_v13 = vunpack.c.l.b16 %v413_v10  ;;  %v559_v14 = vunpack.c.h.b16 %v413_v10  ;;  %v2242_v15 = vld [vmem:[%s2911_s19 + $0xa8] sm:$0xf]  ;;  %v2358_v17 = vld [vmem:[%s2911_s19 + $0xac] sm:$0xf] }
  0x84   : > { %1187 = vmatmul.bf16.vlgmr.msra.gmra.mxu3 %v599_v22  ;;  %v2351_v22 = vld [vmem:[%s2911_s19 + $0x74] sm:$0xf]  ;;  %v417_v10 = vld [vmem:[%s2904_s15 + $0xa8] sm:$0xff] }
  0x85   : > { %1174 = vmatmul.bf16.vlgmr.msra.gmra.mxu2 %v598_v19  ;;  %1290 = vmatpush.bf16.xpose.msra.mxu3 %v2151_v24  ;;  %v2383_v19 = vld [vmem:[%s2911_s19 + $0x16c] sm:$0x10]  ;;  %v611_v24 = vpack.c.b16 %v547_v12, %v547_v12  ;;  %v557_v12 = vunpack.c.h.b16 %v412_v9 }
  0x86   : > { %1277 = vmatpush.bf16.xpose.msra.mxu2 %v2147_v23  ;;  %v2188_v23 = vld [vmem:[%s2911_s19 + $0x170] sm:$0x10]  ;;  %v2187_v27 = vor.u32 %v2383_v19, %v2186_v18  ;;  %v620_v18 = vpack.c.b16 %v556_v11, %v556_v11  ;;  %v2244_v19 = vld [vmem:[%s2911_s19 + $0x1a8] sm:$0x10] }
  0x87   : > { %v2191_v28 = vor.u32 %v2351_v22, %v2188_v23  ;;  %v621_v23 = vpack.c.b16 %v557_v12, %v557_v12  ;;  %v2247_v31 = vor.u32 %v2358_v17, %v2244_v19  ;;  %v2394_v17 = vld [vmem:[%s2911_s19 + $0x1c4] sm:$0x10] }
  0x92   : > { %1200 = vmatmul.bf16.vlgmr.msrb.gmra.mxu0 %v600_v36  ;;  %1213 = vmatmul.bf16.vlgmr.msrb.gmra.mxu1 %v601_v40  ;;  %v2386_v36 = vld [vmem:[%s2911_s19 + $0x184] sm:$0x10]  ;;  %v2202_v40 = vld [vmem:[%s2911_s19 + $0x80] sm:$0xf] }
  0x93   : > { %1303 = vmatpush.bf16.xpose.msrb.mxu0 %v2155_v47  ;;  %1316 = vmatpush.bf16.xpose.msrb.mxu1 %v2159_v48  ;;  %v2211_v47 = vor.u32 %v2386_v36, %v2210_v35  ;;  %v2215_v48 = vor.u32 %v2354_v37, %v2212_v39 }
  0x94   : > { %1239 = vmatmul.bf16.vlgmr.msrb.gmra.mxu3 %v603_v44  ;;  %v2353_v44 = vld [vmem:[%s2911_s19 + $0x84] sm:$0xf] }
  0x95   : > { %1226 = vmatmul.bf16.vlgmr.msrb.gmra.mxu2 %v602_v41  ;;  %1342 = vmatpush.bf16.xpose.msrb.mxu3 %v2167_v46  ;;  %v2385_v41 = vld [vmem:[%s2911_s19 + $0x17c] sm:$0x10]  ;;  %v615_v46 = vpack.c.b16 %v551_v34, %v551_v34 }
  0x96   : > { %1329 = vmatpush.bf16.xpose.msrb.mxu2 %v2163_v45  ;;  %v2204_v45 = vld [vmem:[%s2911_s19 + $0x180] sm:$0x10]  ;;  %v2203_v49 = vor.u32 %v2385_v41, %v2202_v40  ;;  %v415_v40 = vld [vmem:[%s2904_s15 + $0x98] sm:$0xff] }
  0x97   : > { %v2207_v50 = vor.u32 %v2353_v44, %v2204_v45  ;;  %v562_v44 = vunpack.c.l.b16 %v415_v40  ;;  %v563_v45 = vunpack.c.h.b16 %v415_v40 }
  0xa2   : > { %1252 = vmatmul.bf16.vlgmr.msra.gmra.mxu0 %v604_v58  ;;  %1265 = vmatmul.bf16.vlgmr.msra.gmra.mxu1 %v605_v62  ;;  %v2388_v58 = vld [vmem:[%s2911_s19 + $0x194] sm:$0x10]  ;;  %v2218_v62 = vld [vmem:[%s2911_s19 + $0x90] sm:$0xf] }
  0xa3   : > { %1355 = vmatpush.bf16.xpose.msra.mxu0 %v2171_v5  ;;  %1368 = vmatpush.bf16.xpose.msra.mxu1 %v2175_v6  ;;  %v2227_v5 = vor.u32 %v2388_v58, %v2226_v57  ;;  %v2231_v6 = vor.u32 %v2356_v59, %v2228_v61  ;;  %v626_v57 = vpack.c.b16 %v562_v44, %v562_v44  ;;  %v2359_v58 = vld [vmem:[%s2911_s19 + $0xb4] sm:$0xf]  ;;  %v419_v44 = vld [vmem:[%s2904_s15 + $0xb8] sm:$0xff] }
  0xa4   : > { %1291 = vmatmul.bf16.vlgmr.msra.gmra.mxu3 %v607_v2  ;;  %v2355_v2 = vld [vmem:[%s2911_s19 + $0x94] sm:$0xf] }
  0xa5   : > { %1278 = vmatmul.bf16.vlgmr.msra.gmra.mxu2 %v606_v63  ;;  %1394 = vmatpush.bf16.xpose.msra.mxu3 %v2183_v4  ;;  %v2387_v63 = vld [vmem:[%s2911_s19 + $0x18c] sm:$0x10]  ;;  %v619_v4 = vpack.c.b16 %v555_v56, %v555_v56  ;;  %v2252_v59 = vld [vmem:[%s2911_s19 + $0x1b0] sm:$0x10] }
  0xa6   : > { %1381 = vmatpush.bf16.xpose.msra.mxu2 %v2179_v3  ;;  %v2220_v3 = vld [vmem:[%s2911_s19 + $0x190] sm:$0x10]  ;;  %v2219_v7 = vor.u32 %v2387_v63, %v2218_v62  ;;  %v627_v62 = vpack.c.b16 %v563_v45, %v563_v45 }
  0xa7   : > { %v2223_v8 = vor.u32 %v2355_v2, %v2220_v3  ;;  %v2255_v3 = vor.u32 %v2359_v58, %v2252_v59 }
  0xb2   : > { %1304 = vmatmul.bf16.vlgmr.msrb.gmra.mxu0 %v608_v16  ;;  %1317 = vmatmul.bf16.vlgmr.msrb.gmra.mxu1 %v609_v20  ;;  %v2390_v16 = vld [vmem:[%s2911_s19 + $0x1a4] sm:$0x10]  ;;  %v2234_v20 = vld [vmem:[%s2911_s19 + $0xa0] sm:$0xf] }
  0xb3   : > { %1407 = vmatpush.bf16.xpose.msrb.mxu0 %v2187_v27  ;;  %1420 = vmatpush.bf16.xpose.msrb.mxu1 %v2191_v28  ;;  %v623_v28 = vpack.c.b16 %v559_v14, %v559_v14  ;;  %v2243_v29 = vor.u32 %v2390_v16, %v2242_v15  ;;  %v566_v14 = vunpack.c.l.b16 %v417_v10  ;;  %v567_v15 = vunpack.c.h.b16 %v417_v10  ;;  %v2274_v16 = vld [vmem:[%s2911_s19 + $0xc8] sm:$0xf] }
  0xb4   : > { %1343 = vmatmul.bf16.vlgmr.msrb.gmra.mxu3 %v611_v24  ;;  %v622_v24 = vpack.c.b16 %v558_v13, %v558_v13 }
  0xb5   : > { %1330 = vmatmul.bf16.vlgmr.msrb.gmra.mxu2 %v610_v21  ;;  %1446 = vmatpush.bf16.xpose.msrb.mxu3 %v2199_v26  ;;  %v2389_v21 = vld [vmem:[%s2911_s19 + $0x19c] sm:$0x10]  ;;  %v2236_v26 = vld [vmem:[%s2911_s19 + $0x1a0] sm:$0x10] }
  0xb6   : > { %1433 = vmatpush.bf16.xpose.msrb.mxu2 %v2195_v25  ;;  %v2357_v25 = vld [vmem:[%s2911_s19 + $0xa4] sm:$0xf]  ;;  %v2235_v32 = vor.u32 %v2389_v21, %v2234_v20  ;;  %v2276_v21 = vld [vmem:[%s2911_s19 + $0x1c8] sm:$0x10] }
  0xb7   : > { %v2239_v33 = vor.u32 %v2357_v25, %v2236_v26 }
  0xc2   : > { %1356 = vmatmul.bf16.vlgmr.msra.gmra.mxu0 %v612_v38  ;;  %1369 = vmatmul.bf16.vlgmr.msra.gmra.mxu1 %v613_v42  ;;  %v414_v38 = vld [vmem:[%s2904_s15 + $0x90] sm:$0xff] }
  0xc3   : > { %1459 = vmatpush.bf16.xpose.msra.mxu0 %v2203_v49  ;;  %1472 = vmatpush.bf16.xpose.msra.mxu1 %v2207_v50  ;;  %v560_v42 = vunpack.c.l.b16 %v414_v38 }
  0xc4   : > { %1395 = vmatmul.bf16.vlgmr.msra.gmra.mxu3 %v615_v46  ;;  %v2258_v46 = vld [vmem:[%s2911_s19 + $0xb8] sm:$0xf] }
  0xc5   : > { %1382 = vmatmul.bf16.vlgmr.msra.gmra.mxu2 %v614_v43  ;;  %1498 = vmatpush.bf16.xpose.msra.mxu3 %v2215_v48  ;;  %v561_v43 = vunpack.c.h.b16 %v414_v38  ;;  %v2360_v48 = vld [vmem:[%s2911_s19 + $0xbc] sm:$0xf]  ;;  %v624_v50 = vpack.c.b16 %v560_v42, %v560_v42  ;;  %v418_v42 = vld [vmem:[%s2904_s15 + $0xb0] sm:$0xff] }
  0xc6   : > { %1485 = vmatpush.bf16.xpose.msra.mxu2 %v2211_v47  ;;  %v2392_v47 = vld [vmem:[%s2911_s19 + $0x1b4] sm:$0x10] }
  0xc7   : > { %v625_v56 = vpack.c.b16 %v561_v43, %v561_v43  ;;  %v2259_v63 = vor.u32 %v2392_v47, %v2258_v46  ;;  %v568_v46 = vunpack.c.l.b16 %v418_v42  ;;  %v569_v47 = vunpack.c.h.b16 %v418_v42 }
  0xd2   : > { %1408 = vmatmul.bf16.vlgmr.msrb.gmra.mxu0 %v616_v60  ;;  %1421 = vmatmul.bf16.vlgmr.msrb.gmra.mxu1 %v617_v0  ;;  %v2263_v0 = vor.u32 %v2360_v48, %v2260_v51  ;;  %v570_v48 = vunpack.c.l.b16 %v419_v44  ;;  %v2396_v51 = vld [vmem:[%s2911_s19 + $0x1d4] sm:$0x10] }
  0xd3   : > { %1511 = vmatpush.bf16.xpose.msrb.mxu0 %v2219_v7  ;;  %1524 = vmatpush.bf16.xpose.msrb.mxu1 %v2223_v8  ;;  %v416_v8 = vld [vmem:[%s2904_s15 + $0xa0] sm:$0xff] }
  0xd4   : > { %1447 = vmatmul.bf16.vlgmr.msrb.gmra.mxu3 %v619_v4  ;;  %v564_v12 = vunpack.c.l.b16 %v416_v8  ;;  %v565_v13 = vunpack.c.h.b16 %v416_v8 }
  0xd5   : > { %1434 = vmatmul.bf16.vlgmr.msrb.gmra.mxu2 %v618_v1  ;;  %1550 = vmatpush.bf16.xpose.msrb.mxu3 %v2231_v6  ;;  %v2251_v1 = vor.u32 %v2391_v53, %v2250_v52  ;;  %v2364_v52 = vld [vmem:[%s2911_s19 + $0xdc] sm:$0xf] }
  0xd6   : > { %1537 = vmatpush.bf16.xpose.msrb.mxu2 %v2227_v5  ;;  %v628_v20 = vpack.c.b16 %v564_v12, %v564_v12  ;;  %v629_v26 = vpack.c.b16 %v565_v13, %v565_v13  ;;  %v420_v12 = vld [vmem:[%s2904_s15 + $0xc0] sm:$0xff] }
  0xdf   : > { %v1045_v22 = vpop.f32.mrf.mxu0  ;;  %v1058_v27 = vpop.f32.mrf.mxu1 }
  0xe0   : > { %v1059_v30 = vadd.f32 %v1058_v27, %v1045_v22  ;;  %v2266_v22 = vld [vmem:[%s2911_s19 + $0xc0] sm:$0xf]  ;;  %v630_v27 = vpack.c.b16 %v566_v14, %v566_v14  ;;  %v421_v14 = vld [vmem:[%s2904_s15 + $0xc8] sm:$0xff] }
  0xe2   : > { %1460 = vmatmul.bf16.vlgmr.msra.gmra.mxu0 %v620_v18  ;;  %1473 = vmatmul.bf16.vlgmr.msra.gmra.mxu1 %v621_v23  ;;  %v2362_v18 = vld [vmem:[%s2911_s19 + $0xcc] sm:$0xf]  ;;  %v2393_v23 = vld [vmem:[%s2911_s19 + $0x1bc] sm:$0x10] }
  0xe3   : > { %1563 = vmatpush.bf16.xpose.msra.mxu0 %v2235_v32  ;;  %1576 = vmatpush.bf16.xpose.msra.mxu1 %v2239_v33  ;;  %v631_v32 = vpack.c.b16 %v567_v15, %v567_v15  ;;  %v2275_v33 = vor.u32 %v2394_v17, %v2274_v16  ;;  %v572_v16 = vunpack.c.l.b16 %v420_v12  ;;  %v573_v17 = vunpack.c.h.b16 %v420_v12 }
  0xe4   : > { %1499 = vmatmul.bf16.vlgmr.msra.gmra.mxu3 %v623_v28  ;;  %v2361_v28 = vld [vmem:[%s2911_s19 + $0xc4] sm:$0xf] }
  0xe5   : > { %1486 = vmatmul.bf16.vlgmr.msra.gmra.mxu2 %v622_v24  ;;  %1602 = vmatpush.bf16.xpose.msra.mxu3 %v2247_v31 }
  0xe6   : > { %1589 = vmatpush.bf16.xpose.msra.mxu2 %v2243_v29  ;;  %v2268_v29 = vld [vmem:[%s2911_s19 + $0x1c0] sm:$0x10] }
  0xe7   : > { %v1084_v36 = vpop.f32.mrf.mxu3  ;;  %v1047_v37 = vpop.f32.mrf.mxu0 }
  0xe8   : > { %v1071_v34 = vpop.f32.mrf.mxu2  ;;  %v1060_v39 = vpop.f32.mrf.mxu1  ;;  %v2271_v37 = vor.u32 %v2361_v28, %v2268_v29 }
  0xe9   : > { %v1072_v35 = vadd.f32 %v1071_v34, %v1059_v30  ;;  %v2279_v34 = vor.u32 %v2362_v18, %v2276_v21  ;;  %v574_v18 = vunpack.c.l.b16 %v421_v14  ;;  %v2398_v21 = vld [vmem:[%s2911_s19 + $0x1e4] sm:$0x10] }
  0xeb   : > { %v1085_v41 = vadd.f32 %v1084_v36, %v1072_v35  ;;  %v2267_v35 = vor.u32 %v2393_v23, %v2266_v22  ;;  %v2366_v22 = vld [vmem:[%s2911_s19 + $0xec] sm:$0xf] }
  0xef   : > { %v1086_v54 = vpop.f32.mrf.mxu3  ;;  %v1097_v55 = vpop.f32.mrf.mxu0 }
  0xf0   : > { %v1073_v49 = vpop.f32.mrf.mxu2  ;;  %v1098_v60 = vadd.f32 %v1097_v55, %v1085_v41  ;;  %v1110_v61 = vpop.f32.mrf.mxu1  ;;  %v632_v54 = vpack.c.b16 %v568_v46, %v568_v46  ;;  %v2292_v55 = vld [vmem:[%s2911_s19 + $0x1d8] sm:$0x10]  ;;  %v422_v46 = vld [vmem:[%s2904_s15 + $0xd0] sm:$0xff] }
  0xf1   : > { %v571_v49 = vunpack.c.h.b16 %v419_v44 }
  0xf2   : > { %v1111_v2 = vadd.f32 %v1110_v61, %v1098_v60  ;;  %1512 = vmatmul.bf16.vlgmr.msrb.gmra.mxu0 %v624_v50  ;;  %1525 = vmatmul.bf16.vlgmr.msrb.gmra.mxu1 %v625_v56  ;;  %v2290_v50 = vld [vmem:[%s2911_s19 + $0xd8] sm:$0xf]  ;;  %v2282_v56 = vld [vmem:[%s2911_s19 + $0xd0] sm:$0xf]  ;;  %v633_v60 = vpack.c.b16 %v569_v47, %v569_v47  ;;  %v634_v61 = vpack.c.b16 %v570_v48, %v570_v48 }
  0xf3   : > { %1615 = vmatpush.bf16.xpose.msrb.mxu0 %v2251_v1  ;;  %1628 = vmatpush.bf16.xpose.msrb.mxu1 %v2255_v3  ;;  %v2291_v3 = vor.u32 %v2396_v51, %v2290_v50  ;;  %v423_v48 = vld [vmem:[%s2904_s15 + $0xd8] sm:$0xff]  ;;  %v576_v50 = vunpack.c.l.b16 %v422_v46  ;;  %v577_v51 = vunpack.c.h.b16 %v422_v46 }
  0xf4   : > { %1551 = vmatmul.bf16.vlgmr.msrb.gmra.mxu3 %v627_v62  ;;  %v2363_v62 = vld [vmem:[%s2911_s19 + $0xd4] sm:$0xf] }
  0xf5   : > { %1538 = vmatmul.bf16.vlgmr.msrb.gmra.mxu2 %v626_v57  ;;  %1654 = vmatpush.bf16.xpose.msrb.mxu3 %v2263_v0  ;;  %v2395_v57 = vld [vmem:[%s2911_s19 + $0x1cc] sm:$0x10] }
  0xf6   : > { %1641 = vmatpush.bf16.xpose.msrb.mxu2 %v2259_v63  ;;  %v2284_v63 = vld [vmem:[%s2911_s19 + $0x1d0] sm:$0x10] }
  0xf7   : > { %v1136_v6 = vpop.f32.mrf.mxu3  ;;  %v1099_v7 = vpop.f32.mrf.mxu0 }
  0xf8   : > { %v1123_v4 = vpop.f32.mrf.mxu2  ;;  %v1112_v9 = vpop.f32.mrf.mxu1  ;;  %v2287_v7 = vor.u32 %v2363_v62, %v2284_v63 }
  0xf9   : > { %v1124_v5 = vadd.f32 %v1123_v4, %v1111_v2  ;;  %v635_v2 = vpack.c.b16 %v571_v49, %v571_v49  ;;  %v2295_v4 = vor.u32 %v2364_v52, %v2292_v55  ;;  %v578_v52 = vunpack.c.l.b16 %v423_v48  ;;  %v2400_v55 = vld [vmem:[%s2911_s19 + $0x1f4] sm:$0x10] }
  0xfb   : > { %v1137_v11 = vadd.f32 %v1136_v6, %v1124_v5  ;;  %v2283_v5 = vor.u32 %v2395_v57, %v2282_v56  ;;  %v2368_v56 = vld [vmem:[%s2911_s19 + $0xfc] sm:$0xf] }
  0xff   : > { %v1138_v24 = vpop.f32.mrf.mxu3  ;;  %v1149_v25 = vpop.f32.mrf.mxu0 }
 0x100   : > { %v1125_v19 = vpop.f32.mrf.mxu2  ;;  %v1150_v30 = vadd.f32 %v1149_v25, %v1137_v11  ;;  %v1162_v31 = vpop.f32.mrf.mxu1  ;;  %v636_v24 = vpack.c.b16 %v572_v16, %v572_v16  ;;  %v2308_v25 = vld [vmem:[%s2911_s19 + $0x1e8] sm:$0x10]  ;;  %v424_v16 = vld [vmem:[%s2904_s15 + $0xe0] sm:$0xff] }
 0x101   : > { %v575_v19 = vunpack.c.h.b16 %v421_v14 }
 0x102   : > { %v1163_v36 = vadd.f32 %v1162_v31, %v1150_v30  ;;  %1564 = vmatmul.bf16.vlgmr.msra.gmra.mxu0 %v628_v20  ;;  %1577 = vmatmul.bf16.vlgmr.msra.gmra.mxu1 %v629_v26  ;;  %v2306_v20 = vld [vmem:[%s2911_s19 + $0xe8] sm:$0xf]  ;;  %v2298_v26 = vld [vmem:[%s2911_s19 + $0xe0] sm:$0xf]  ;;  %v637_v30 = vpack.c.b16 %v573_v17, %v573_v17  ;;  %v638_v31 = vpack.c.b16 %v574_v18, %v574_v18 }
 0x103   : > { %1667 = vmatpush.bf16.xpose.msra.mxu0 %v2267_v35  ;;  %1680 = vmatpush.bf16.xpose.msra.mxu1 %v2271_v37  ;;  %v2307_v37 = vor.u32 %v2398_v21, %v2306_v20  ;;  %v425_v18 = vld [vmem:[%s2904_s15 + $0xe8] sm:$0xff]  ;;  %v580_v20 = vunpack.c.l.b16 %v424_v16  ;;  %v581_v21 = vunpack.c.h.b16 %v424_v16 }
 0x104   : > { %1603 = vmatmul.bf16.vlgmr.msra.gmra.mxu3 %v631_v32  ;;  %v2365_v32 = vld [vmem:[%s2911_s19 + $0xe4] sm:$0xf] }
 0x105   : > { %1590 = vmatmul.bf16.vlgmr.msra.gmra.mxu2 %v630_v27  ;;  %1706 = vmatpush.bf16.xpose.msra.mxu3 %v2279_v34  ;;  %v2397_v27 = vld [vmem:[%s2911_s19 + $0x1dc] sm:$0x10] }
 0x106   : > { %1693 = vmatpush.bf16.xpose.msra.mxu2 %v2275_v33  ;;  %v2300_v33 = vld [vmem:[%s2911_s19 + $0x1e0] sm:$0x10] }
 0x107   : > { %v1188_v40 = vpop.f32.mrf.mxu3  ;;  %v1151_v41 = vpop.f32.mrf.mxu0 }
 0x108   : > { %v1175_v38 = vpop.f32.mrf.mxu2  ;;  %v1164_v43 = vpop.f32.mrf.mxu1  ;;  %v2303_v41 = vor.u32 %v2365_v32, %v2300_v33 }
 0x109   : > { %v1176_v39 = vadd.f32 %v1175_v38, %v1163_v36  ;;  %v639_v36 = vpack.c.b16 %v575_v19, %v575_v19  ;;  %v2311_v38 = vor.u32 %v2366_v22, %v2308_v25  ;;  %v582_v22 = vunpack.c.l.b16 %v425_v18 }
 0x10a   : > { %v644_v25 = vpack.c.b16 %v580_v20, %v580_v20 }
 0x10b   : > { %v1189_v45 = vadd.f32 %v1188_v40, %v1176_v39  ;;  %v2299_v39 = vor.u32 %v2397_v27, %v2298_v26 }
 0x10f   : > { %v1190_v58 = vpop.f32.mrf.mxu3  ;;  %v1201_v59 = vpop.f32.mrf.mxu0 }
 0x110   : > { %v1177_v53 = vpop.f32.mrf.mxu2  ;;  %v1202_v0 = vadd.f32 %v1201_v59, %v1189_v45  ;;  %v1214_v1 = vpop.f32.mrf.mxu1  ;;  %v640_v58 = vpack.c.b16 %v576_v50, %v576_v50  ;;  %v2324_v59 = vld [vmem:[%s2911_s19 + $0x1f8] sm:$0x10] }
 0x111   : > { %v579_v53 = vunpack.c.h.b16 %v423_v48 }
 0x112   : > { %v1215_v6 = vadd.f32 %v1214_v1, %v1202_v0  ;;  %1616 = vmatmul.bf16.vlgmr.msrb.gmra.mxu0 %v632_v54  ;;  %1629 = vmatmul.bf16.vlgmr.msrb.gmra.mxu1 %v633_v60  ;;  %v2322_v54 = vld [vmem:[%s2911_s19 + $0xf8] sm:$0xf]  ;;  %v2314_v60 = vld [vmem:[%s2911_s19 + $0xf0] sm:$0xf]  ;;  %v641_v0 = vpack.c.b16 %v577_v51, %v577_v51  ;;  %v642_v1 = vpack.c.b16 %v578_v52, %v578_v52 }
 0x113   : > { %1719 = vmatpush.bf16.xpose.msrb.mxu0 %v2283_v5  ;;  %1732 = vmatpush.bf16.xpose.msrb.mxu1 %v2287_v7  ;;  %v2323_v7 = vor.u32 %v2400_v55, %v2322_v54 }
 0x114   : > { %1655 = vmatmul.bf16.vlgmr.msrb.gmra.mxu3 %v635_v2  ;;  %v2367_v2 = vld [vmem:[%s2911_s19 + $0xf4] sm:$0xf] }
 0x115   : > { %1642 = vmatmul.bf16.vlgmr.msrb.gmra.mxu2 %v634_v61  ;;  %1758 = vmatpush.bf16.xpose.msrb.mxu3 %v2295_v4  ;;  %v2399_v61 = vld [vmem:[%s2911_s19 + $0x1ec] sm:$0x10] }
 0x116   : > { %1745 = vmatpush.bf16.xpose.msrb.mxu2 %v2291_v3  ;;  %v2316_v3 = vld [vmem:[%s2911_s19 + $0x1f0] sm:$0x10] }
 0x117   : > { %v1240_v10 = vpop.f32.mrf.mxu3  ;;  %v1203_v11 = vpop.f32.mrf.mxu0 }
 0x118   : > { %v1227_v8 = vpop.f32.mrf.mxu2  ;;  %v1216_v13 = vpop.f32.mrf.mxu1  ;;  %v2319_v11 = vor.u32 %v2367_v2, %v2316_v3 }
 0x119   : > { %v1228_v9 = vadd.f32 %v1227_v8, %v1215_v6  ;;  %v643_v6 = vpack.c.b16 %v579_v53, %v579_v53  ;;  %v2327_v8 = vor.u32 %v2368_v56, %v2324_v59 }
 0x11b   : > { %v1241_v15 = vadd.f32 %v1240_v10, %v1228_v9  ;;  %v2315_v9 = vor.u32 %v2399_v61, %v2314_v60 }
 0x11f   : > { %v1242_v28 = vpop.f32.mrf.mxu3  ;;  %v1253_v29 = vpop.f32.mrf.mxu0 }
 0x120   : > { %v1229_v23 = vpop.f32.mrf.mxu2  ;;  %v1254_v34 = vadd.f32 %v1253_v29, %v1241_v15  ;;  %v1266_v35 = vpop.f32.mrf.mxu1  ;;  %v645_v28 = vpack.c.b16 %v581_v21, %v581_v21  ;;  %v646_v29 = vpack.c.b16 %v582_v22, %v582_v22 }
 0x121   : > { %v583_v23 = vunpack.c.h.b16 %v425_v18 }
 0x122   : > { %v1267_v40 = vadd.f32 %v1266_v35, %v1254_v34  ;;  %1668 = vmatmul.bf16.vlgmr.msra.gmra.mxu0 %v636_v24  ;;  %1681 = vmatmul.bf16.vlgmr.msra.gmra.mxu1 %v637_v30 }
 0x123   : > { %1771 = vmatpush.bf16.xpose.msra.mxu0 %v2299_v39  ;;  %1784 = vmatpush.bf16.xpose.msra.mxu1 %v2303_v41  ;;  %v647_v32 = vpack.c.b16 %v583_v23, %v583_v23 }
 0x124   : > { %1707 = vmatmul.bf16.vlgmr.msra.gmra.mxu3 %v639_v36 }
 0x125   : > { %1694 = vmatmul.bf16.vlgmr.msra.gmra.mxu2 %v638_v31  ;;  %1810 = vmatpush.bf16.xpose.msra.mxu3 %v2311_v38  ;;  %v426_v38 = vld [vmem:[%s2904_s15 + $0xf0] sm:$0xff] }
 0x126   : > { %1797 = vmatpush.bf16.xpose.msra.mxu2 %v2307_v37 }
 0x127   : > { %v1292_v44 = vpop.f32.mrf.mxu3  ;;  %v1255_v45 = vpop.f32.mrf.mxu0 }
 0x128   : > { %v1279_v42 = vpop.f32.mrf.mxu2  ;;  %v1268_v47 = vpop.f32.mrf.mxu1 }
 0x129   : > { %v1280_v43 = vadd.f32 %v1279_v42, %v1267_v40  ;;  %v427_v40 = vld [vmem:[%s2904_s15 + $0xf8] sm:$0xff]  ;;  %v584_v42 = vunpack.c.l.b16 %v426_v38 }
 0x12a   : > { %v587_v45 = vunpack.c.h.b16 %v427_v40 }
 0x12b   : > { %v1293_v49 = vadd.f32 %v1292_v44, %v1280_v43  ;;  %v585_v43 = vunpack.c.h.b16 %v426_v38  ;;  %v586_v44 = vunpack.c.l.b16 %v427_v40  ;;  %v648_v47 = vpack.c.b16 %v584_v42, %v584_v42 }
 0x12c   : > { %v651_v54 = vpack.c.b16 %v587_v45, %v587_v45 }
 0x12d   : > { %v649_v50 = vpack.c.b16 %v585_v43, %v585_v43  ;;  %v650_v51 = vpack.c.b16 %v586_v44, %v586_v44 }
 0x12f   : > { %v1294_v62 = vpop.f32.mrf.mxu3  ;;  %v1305_v63 = vpop.f32.mrf.mxu0 }
 0x130   : > { %v1281_v57 = vpop.f32.mrf.mxu2  ;;  %v1306_v4 = vadd.f32 %v1305_v63, %v1293_v49  ;;  %v1318_v5 = vpop.f32.mrf.mxu1 }
 0x132   : > { %v1319_v10 = vadd.f32 %v1318_v5, %v1306_v4  ;;  %1720 = vmatmul.bf16.vlgmr.msrb.gmra.mxu0 %v640_v58  ;;  %1733 = vmatmul.bf16.vlgmr.msrb.gmra.mxu1 %v641_v0 }
 0x133   : > { %1823 = vmatpush.bf16.xpose.msrb.mxu0 %v2315_v9  ;;  %1836 = vmatpush.bf16.xpose.msrb.mxu1 %v2319_v11 }
 0x134   : > { %1759 = vmatmul.bf16.vlgmr.msrb.gmra.mxu3 %v643_v6 }
 0x135   : > { %1746 = vmatmul.bf16.vlgmr.msrb.gmra.mxu2 %v642_v1  ;;  %1862 = vmatpush.bf16.xpose.msrb.mxu3 %v2327_v8 }
 0x136   : > { %1849 = vmatpush.bf16.xpose.msrb.mxu2 %v2323_v7 }
 0x137   : > { %v1344_v14 = vpop.f32.mrf.mxu3  ;;  %v1307_v15 = vpop.f32.mrf.mxu0 }
 0x138   : > { %v1331_v12 = vpop.f32.mrf.mxu2  ;;  %v1320_v17 = vpop.f32.mrf.mxu1 }
 0x139   : > { %v1332_v13 = vadd.f32 %v1331_v12, %v1319_v10 }
 0x13b   : > { %v1345_v19 = vadd.f32 %v1344_v14, %v1332_v13 }
 0x13f   : > { %v1346_v26 = vpop.f32.mrf.mxu3  ;;  %v1357_v27 = vpop.f32.mrf.mxu0 }
 0x140   : > { %v1333_v24 = vpop.f32.mrf.mxu2  ;;  %v1358_v30 = vadd.f32 %v1357_v27, %v1345_v19  ;;  %v1370_v31 = vpop.f32.mrf.mxu1 }
 0x142   : > { %v1371_v33 = vadd.f32 %v1370_v31, %v1358_v30  ;;  %1772 = vmatmul.bf16.vlgmr.msra.gmra.mxu0 %v644_v25  ;;  %1785 = vmatmul.bf16.vlgmr.msra.gmra.mxu1 %v645_v28 }
 0x144   : > { %1811 = vmatmul.bf16.vlgmr.msra.gmra.mxu3 %v647_v32 }
 0x145   : > { %1798 = vmatmul.bf16.vlgmr.msra.gmra.mxu2 %v646_v29 }
 0x147   : > { %v1396_v36 = vpop.f32.mrf.mxu3  ;;  %v1359_v37 = vpop.f32.mrf.mxu0 }
 0x148   : > { %v1383_v34 = vpop.f32.mrf.mxu2  ;;  %v1372_v39 = vpop.f32.mrf.mxu1 }
 0x149   : > { %v1384_v35 = vadd.f32 %v1383_v34, %v1371_v33 }
 0x14b   : > { %v1397_v41 = vadd.f32 %v1396_v36, %v1384_v35 }
 0x14f   : > { %v1398_v48 = vpop.f32.mrf.mxu3  ;;  %v1409_v49 = vpop.f32.mrf.mxu0 }
 0x150   : > { %v1385_v46 = vpop.f32.mrf.mxu2  ;;  %v1410_v52 = vadd.f32 %v1409_v49, %v1397_v41  ;;  %v1422_v53 = vpop.f32.mrf.mxu1 }
 0x152   : > { %v1423_v55 = vadd.f32 %v1422_v53, %v1410_v52  ;;  %1824 = vmatmul.bf16.vlgmr.msrb.gmra.mxu0 %v648_v47  ;;  %1837 = vmatmul.bf16.vlgmr.msrb.gmra.mxu1 %v649_v50 }
 0x154   : > { %1863 = vmatmul.bf16.vlgmr.msrb.gmra.mxu3 %v651_v54 }
 0x155   : > { %1850 = vmatmul.bf16.vlgmr.msrb.gmra.mxu2 %v650_v51 }
 0x157   : > { %v1448_v58 = vpop.f32.mrf.mxu3  ;;  %v1411_v59 = vpop.f32.mrf.mxu0 }
 0x158   : > { %v1435_v56 = vpop.f32.mrf.mxu2  ;;  %v1424_v60 = vpop.f32.mrf.mxu1 }
 0x159   : > { %v1436_v57 = vadd.f32 %v1435_v56, %v1423_v55 }
 0x15b   : > { %v1449_v61 = vadd.f32 %v1448_v58, %v1436_v57 }
 0x15f   : > { %v1450_v63 = vpop.f32.mrf.mxu3  ;;  %v1461_v0 = vpop.f32.mrf.mxu0 }
 0x160   : > { %v1437_v62 = vpop.f32.mrf.mxu2  ;;  %v1474_v1 = vpop.f32.mrf.mxu1  ;;  %v1462_v14 = vadd.f32 %v1461_v0, %v1449_v61 }
 0x162   : > { %v1475_v19 = vadd.f32 %v1474_v1, %v1462_v14 }
 0x167   : > { %v1500_v3 = vpop.f32.mrf.mxu3  ;;  %v1463_v4 = vpop.f32.mrf.mxu0 }
 0x168   : > { %v1487_v2 = vpop.f32.mrf.mxu2  ;;  %v1476_v5 = vpop.f32.mrf.mxu1 }
 0x169   : > { %v1488_v20 = vadd.f32 %v1487_v2, %v1475_v19 }
 0x16b   : > { %v1501_v22 = vadd.f32 %v1500_v3, %v1488_v20 }
 0x16f   : > { %v1502_v7 = vpop.f32.mrf.mxu3  ;;  %v1513_v8 = vpop.f32.mrf.mxu0 }
 0x170   : > { %v1489_v6 = vpop.f32.mrf.mxu2  ;;  %v1526_v9 = vpop.f32.mrf.mxu1  ;;  %v1514_v26 = vadd.f32 %v1513_v8, %v1501_v22 }
 0x172   : > { %v1527_v27 = vadd.f32 %v1526_v9, %v1514_v26 }
 0x177   : > { %v1552_v11 = vpop.f32.mrf.mxu3  ;;  %v1515_v12 = vpop.f32.mrf.mxu0 }
 0x178   : > { %v1539_v10 = vpop.f32.mrf.mxu2  ;;  %v1528_v13 = vpop.f32.mrf.mxu1 }
 0x179   : > { %v1540_v29 = vadd.f32 %v1539_v10, %v1527_v27 }
 0x17b   : > { %v1553_v33 = vadd.f32 %v1552_v11, %v1540_v29 }
 0x17f   : > { %v1554_v16 = vpop.f32.mrf.mxu3  ;;  %v1565_v17 = vpop.f32.mrf.mxu0 }
 0x180   : > { %v1541_v15 = vpop.f32.mrf.mxu2  ;;  %v1578_v18 = vpop.f32.mrf.mxu1  ;;  %v1566_v34 = vadd.f32 %v1565_v17, %v1553_v33 }
 0x182   : > { %v1579_v39 = vadd.f32 %v1578_v18, %v1566_v34 }
 0x187   : > { %v1604_v23 = vpop.f32.mrf.mxu3  ;;  %v1567_v24 = vpop.f32.mrf.mxu0 }
 0x188   : > { %v1591_v21 = vpop.f32.mrf.mxu2  ;;  %v1580_v25 = vpop.f32.mrf.mxu1 }
 0x189   : > { %v1592_v40 = vadd.f32 %v1591_v21, %v1579_v39 }
 0x18b   : > { %v1605_v42 = vadd.f32 %v1604_v23, %v1592_v40 }
 0x18f   : > { %v1606_v30 = vpop.f32.mrf.mxu3  ;;  %v1617_v31 = vpop.f32.mrf.mxu0 }
 0x190   : > { %v1593_v28 = vpop.f32.mrf.mxu2  ;;  %v1630_v32 = vpop.f32.mrf.mxu1  ;;  %v1618_v46 = vadd.f32 %v1617_v31, %v1605_v42 }
 0x191   : > { %v395_v28 = vld [vmem:[#allocation2] sm:$0xff] }
 0x192   : > { %v1631_v47 = vadd.f32 %v1630_v32, %v1618_v46 }
 0x197   : > { %v1656_v36 = vpop.f32.mrf.mxu3  ;;  %v1619_v37 = vpop.f32.mrf.mxu0 }
 0x198   : > { %v1643_v35 = vpop.f32.mrf.mxu2  ;;  %v1632_v38 = vpop.f32.mrf.mxu1 }
 0x199   : > { %v1644_v49 = vadd.f32 %v1643_v35, %v1631_v47 }
 0x19b   : > { %v1657_v53 = vadd.f32 %v1656_v36, %v1644_v49 }
 0x19f   : > { %v1658_v43 = vpop.f32.mrf.mxu3  ;;  %v1669_v44 = vpop.f32.mrf.mxu0 }
 0x1a0   : > { %v1645_v41 = vpop.f32.mrf.mxu2  ;;  %v1682_v45 = vpop.f32.mrf.mxu1  ;;  %v1670_v54 = vadd.f32 %v1669_v44, %v1657_v53 }
 0x1a2   : > { %v1683_v59 = vadd.f32 %v1682_v45, %v1670_v54 }
 0x1a7   : > { %v1708_v50 = vpop.f32.mrf.mxu3  ;;  %v1671_v51 = vpop.f32.mrf.mxu0 }
 0x1a8   : > { %v1695_v48 = vpop.f32.mrf.mxu2  ;;  %v1684_v52 = vpop.f32.mrf.mxu1 }
 0x1a9   : > { %v1696_v60 = vadd.f32 %v1695_v48, %v1683_v59 }
 0x1ab   : > { %v1709_v62 = vadd.f32 %v1708_v50, %v1696_v60 }
 0x1af   : > { %v1710_v56 = vpop.f32.mrf.mxu3  ;;  %v1721_v57 = vpop.f32.mrf.mxu0 }
 0x1b0   : > { %v1697_v55 = vpop.f32.mrf.mxu2  ;;  %v1734_v58 = vpop.f32.mrf.mxu1  ;;  %v1722_v2 = vadd.f32 %v1721_v57, %v1709_v62 }
 0x1b2   : > { %v1735_v3 = vadd.f32 %v1734_v58, %v1722_v2 }
 0x1b7   : > { %v1760_v63 = vpop.f32.mrf.mxu3  ;;  %v1723_v0 = vpop.f32.mrf.mxu0 }
 0x1b8   : > { %v1747_v61 = vpop.f32.mrf.mxu2  ;;  %v1736_v1 = vpop.f32.mrf.mxu1 }
 0x1b9   : > { %v1748_v5 = vadd.f32 %v1747_v61, %v1735_v3 }
 0x1bb   : > { %v1761_v9 = vadd.f32 %v1760_v63, %v1748_v5 }
 0x1bf   : > { %v1762_v6 = vpop.f32.mrf.mxu3  ;;  %v1773_v7 = vpop.f32.mrf.mxu0 }
 0x1c0   : > { %v1749_v4 = vpop.f32.mrf.mxu2  ;;  %v1786_v8 = vpop.f32.mrf.mxu1  ;;  %v1774_v10 = vadd.f32 %v1773_v7, %v1761_v9 }
 0x1c2   : > { %v1787_v15 = vadd.f32 %v1786_v8, %v1774_v10 }
 0x1c7   : > { %v1812_v12 = vpop.f32.mrf.mxu3  ;;  %v1775_v13 = vpop.f32.mrf.mxu0 }
 0x1c8   : > { %v1799_v11 = vpop.f32.mrf.mxu2  ;;  %v1788_v14 = vpop.f32.mrf.mxu1 }
 0x1c9   : > { %v1800_v16 = vadd.f32 %v1799_v11, %v1787_v15 }
 0x1cb   : > { %v1813_v18 = vadd.f32 %v1812_v12, %v1800_v16 }
 0x1cf   : > { %v1814_v19 = vpop.f32.mrf.mxu3  ;;  %v1825_v20 = vpop.f32.mrf.mxu0 }
 0x1d0   : > { %v1801_v17 = vpop.f32.mrf.mxu2  ;;  %v1838_v21 = vpop.f32.mrf.mxu1  ;;  %v1826_v22 = vadd.f32 %v1825_v20, %v1813_v18 }
 0x1d2   : > { %v1839_v23 = vadd.f32 %v1838_v21, %v1826_v22 }
 0x1d7   : > { %v1864_v26 = vpop.f32.mrf.mxu3  ;;  %v1827_v27 = vpop.f32.mrf.mxu0 }
 0x1d8   : > { %v1851_v24 = vpop.f32.mrf.mxu2  ;;  %v1840_v29 = vpop.f32.mrf.mxu1 }
 0x1d9   : > { %v1852_v25 = vadd.f32 %v1851_v24, %v1839_v23 }
 0x1db   : > { %v1865_v30 = vadd.f32 %v1864_v26, %v1852_v25 }
 0x1dc   : > { %1874 = sbr.rel (%p2328_p1) target bundleno = 752 (0x2f0), region = 80 }
 0x1dd   : > { %v1868_v31 = vadd.f32 %v1865_v30, %v395_v28 }
 0x1df   : > { %1870 = vst.msk [vmem:[#allocation2] sm:$0xff] %vm1869_vm1, %v1868_v31  ;;  %v1866_v33 = vpop.f32.mrf.mxu3 }
 0x1e0   : > { %v1853_v32 = vpop.f32.mrf.mxu2 }
 0x1e1   : > { %v1883_v34 = vld [vmem:[#allocation8 + $0x8] sm:$0x3]  ;;  %vm1891_vm2 = vcmask 1041408   ;;  %v1882_v35 = vld [vmem:[#allocation8] sm:$0xff]  ;;  %v2492_v37 = vld [vmem:[#allocation7] ss:$0 sm:$0xff] }
 0x1e2   : > { %2329 = vmatpush.msk.msra.mxu0 %vm1891_vm2, %v1883_v34  ;;  %v1918_v40 = vld [vmem:[%s3122_s5 + $0x8] sm:$0x3]  ;;  %v1917_v41 = vld [vmem:[%s3122_s5] sm:$0xff]  ;;  %v2493_v42 = vld [vmem:[#allocation10] ss:$0 sm:$0xff]  ;;  %vm1949_vm3 = vcmask 15360  }
 0x1e3   : > { %2331 = vmatpush.msk.msra.mxu1 %vm1891_vm2, %v1918_v40  ;;  %v2494_v47 = vld [vmem:[#allocation11] ss:$0 sm:$0xff] }
 0x1e4   : > { %1910 = vmatpush.msra.mxu0 %v1882_v35 }
 0x1e5   : > { %1944 = vmatpush.msra.mxu1 %v1917_v41 }
 0x1e6   : > { %v1875_v36 = vld [vmem:[#allocation2] sm:$0xff] }
 0x1e7   : > { %v1880_v38 = vadd.f32 %v2492_v37, %v1875_v36 }
 0x1e9   : > { %v1881_v39 = vmax.f32 %v1880_v38, 0.0 }
 0x1eb   : > { %2330 = vmatmul.msk.f32.vlgmr.msra.gmra.mxu0 %vm1869_vm1, %v1881_v39 }
 0x268   : > { %v1912_v43 = vpop.f32.mrf.mxu0 }
 0x269   : > { %v1913_v44 = vadd.f32 %v2493_v42, %v1912_v43 }
 0x26b   : > { %v1915_v45 = vmax.f32 %v1913_v44, 0.0 }
 0x26d   : > { %v1916_v46 = vadd.f32 %v1915_v45, %v1881_v39 }
 0x26f   : > { %2332 = vmatmul.msk.f32.vlgmr.msra.gmra.mxu1 %vm1869_vm1, %v1916_v46 }
 0x2ec   : > { %v1946_v48 = vpop.f32.mrf.mxu1 }
 0x2ed   : > { %v1947_v49 = vadd.f32 %v2494_v47, %v1946_v48 }
 0x2ef   : > { %1950 = vst.msk [vmem:[%s3124_s7] sm:$0xff] %vm1949_vm3, %v1947_v49 }
 0x2f0 PF: > { %p22_p3 = scmp.ge.s32.totalorder %s2837_s13, 10   ;;  %s3135_s24 = smov %s2717_s25 }
 0x2f1   : > { %s3136_s25 = smov %s2721_s26  ;;  %s3137_s26 = smov %s2849_s17 }
 0x2f2   : > { %s3138_s27 = smov %s2837_s13  ;;  %24 = sbr.rel (!%p22_p3) target bundleno = 11 (0xb), region = 121 }
 0x2f7   :  { %1962 = vsyncpa [#allocation4], 1 }
 0x2f8   :  { %1964 = vsyncpa [#allocation4 + $0x1], 1 }
 0x2f9   :  { %1965 = vsyncpa [#allocation6], 1 }
 0x2fa   :  { %1967 = vsyncpa [#allocation6 + $0x1], 1 }
 0x2fb   :  { %1968 = vsyncpa [#allocation9], 1 }
 0x2fc   :  { %1969 = vsyncpa [#allocation12], 1 }

// kernel: _lambda_.1
= control target key start
LH: loop header
LB: loop body
LE: loop exit
PB: predicated region body
PF: predicated region fallthrough
CT: control target
= control target key end

     0   :  { %s3117_s0 = inlined_call_operand.hbm [shape: bf16[8,65536], index: 0, kind: input, shape index: {}]   ;;  %s3118_s1 = inlined_call_operand.hbm [shape: bf16[10,65536], index: 1, kind: input, shape index: {}]   ;;  %s3119_s2 = inlined_call_operand.hbm [shape: f32[1,10], index: 2, kind: input, shape index: {}]   ;;  %s3120_s3 = inlined_call_operand.hbm [shape: f32[10,10], index: 3, kind: input, shape index: {}]   ;;  %s3121_s4 = inlined_call_operand.hbm [shape: f32[1,10], index: 4, kind: input, shape index: {}]   ;;  %s3122_s5 = inlined_call_operand.vmem [shape: f32[10,2], index: 5, kind: input, shape index: {}]   ;;  %s3123_s6 = inlined_call_operand.hbm [shape: f32[1,2], index: 6, kind: input, shape index: {}]   ;;  %s3124_s7 = inlined_call_operand.vmem [shape: f32[8,2], index: 7, kind: output, shape index: {}]  }
   0x1   :  { %3125 = sst [smem:[#allocation18_spill]] %s3119_s2 }
   0x2   :  { %3126 = sst [smem:[#allocation19_spill]] %s3120_s3 }
   0x3   :  { %3127 = sst [smem:[#allocation20_spill]] %s3121_s4 }
   0x4   :  { %12 = vsyncpa [#allocation4], 0 }
   0x5   :  { %14 = vsyncpa [#allocation4 + $0x1], 0 }
   0x6   :  { %15 = vsyncpa [#allocation6], 0 }
   0x7   :  { %17 = vsyncpa [#allocation6 + $0x1], 0 }
   0x8   :  { %18 = vsyncpa [#allocation9], 0 }
   0x9   :  { %19 = vsyncpa [#allocation12], 0  ;;  %s2777_s24 = smov 0   ;;  %s2779_s25 = smov 0  }
   0xa   :  { %s2781_s26 = smov 0   ;;  %s2783_s27 = smov 0  }
   0xb LB: > { %s3128_s2 = sld [smem:[#allocation18_spill]]  ;;  %s2801_s8 = sadd.s32 4294967295, %s2725_s27   ;;  %s2725_s27 = sphi %s2783_s27, %s3138_s27   ;;  %s2721_s26 = sphi %s2781_s26, %s3137_s26   ;;  %s2717_s25 = sphi %s2779_s25, %s3136_s25   ;;  %s2713_s24 = sphi %s2777_s24, %s3135_s24  }
   0xc   : > { %p2052_p0 = scmp.ge.s32.totalorder %s2725_s27, 1  ;;  %p46_p1 = scmp.eq.s32.totalorder %s2801_s8, 0 }
   0xd   : > { %p208_p2 = scmp.lt.s32.totalorder %s2725_s27, 9  ;;  %p2053_p3 = scmp.ne.s32.totalorder %s2801_s8, 0 }
   0xe   : > { %s2727_s10 = smov [#allocation7]   ;;  %s3130_s3 = sld [smem:[#allocation19_spill]] }
   0xf   : > { %p2807_p4 = pnand %p2052_p0, %p208_p2  ;;  %s222_s11 = sshll.u32 %s2727_s10, 4  ;;  %s223_s11 = int_to_ptr.vmem [resolvable:$true] %s222_s11 }
  0x10   : > { %s2728_s16 = smov [#allocation8]   ;;  %s2729_s18 = smov 128  }
  0x11   : > { %s220_s30 = sshll.u32 %s3128_s2, 4  ;;  %p2421_p5 = pneg %p2807_p4  ;;  %s221_s30 = int_to_ptr.hbm [resolvable:$true] %s220_s30 }
  0x12   : > { %s233_s17 = sshll.u32 %s2728_s16, 4  ;;  %s2730_s19 = smov 8   ;;  %s234_s17 = int_to_ptr.vmem [resolvable:$true] %s233_s17 }
  0x13   : > { %p2818_p6 = pnand %p2421_p5, %p46_p1  ;;  %s3132_s4 = sld [smem:[#allocation20_spill]] }
  0x14   : > { %s231_s14 = sshll.u32 %s3130_s3, 4  ;;  %s2731_s23 = smov [#allocation10]   ;;  %s232_s14 = int_to_ptr.hbm [resolvable:$true] %s231_s14 }
  0x15   : > { %2424 = dma.hbm_to_vmem [thread:$0]  (!%p2818_p6), %s221_s30, 16, %s223_s11, [#allocation6]  }
  0x16   : > { %2427 = dma.hbm_to_vmem [thread:$0]  (!%p2818_p6), %s232_s14, 256, %s234_s17, [#allocation9], %s2729_s18, %s2729_s18, %s2730_s19  }
  0x17   : > { %s248_s28 = sshll.u32 %s2731_s23, 4  ;;  %s261_s10 = sshll.u32 %s3123_s6, 4  ;;  %s249_s28 = int_to_ptr.vmem [resolvable:$true] %s248_s28  ;;  %s262_s10 = int_to_ptr.hbm [resolvable:$true] %s261_s10 }
  0x18   : > { %s2732_s11 = smov [#allocation11]   ;;  %s2837_s13 = sadd.s32 1, %s2725_s27  }
  0x19   : > { %s246_s22 = sshll.u32 %s3132_s4, 4  ;;  %s263_s12 = sshll.u32 %s2732_s11, 4  ;;  %s247_s22 = int_to_ptr.hbm [resolvable:$true] %s246_s22  ;;  %s264_s12 = int_to_ptr.vmem [resolvable:$true] %s263_s12 }
  0x1a   : > { %2430 = dma.hbm_to_vmem [thread:$0]  (!%p2818_p6), %s247_s22, 16, %s249_s28, [#allocation9]  }
  0x1b   : > { %2433 = dma.hbm_to_vmem [thread:$0]  (!%p2818_p6), %s262_s10, 16, %s264_s12, [#allocation12]  }
  0x1c   : > { %s32_s14 = sadd.s32 1, %s2721_s26  ;;  %s29_s16 = ssub.s32 %s2725_s27, %s2837_s13 }
  0x1d   : > { %p39_p7 = scmp.ne.s32.totalorder %s2721_s26, %s2717_s25  ;;  %p30_p8 = scmp.eq.s32.totalorder %s29_s16, 0 }
  0x1e   : > { %p40_p9 = scmp.eq.s32.totalorder %s2725_s27, 0  ;;  %p45_p10 = scmp.ne.s32.totalorder %s2717_s25, %s2713_s24 }
  0x1f   : > { %p2445_p11 = scmp.lt.s32.totalorder %s2725_s27, 8  ;;  %s2858_s15 = sand.u32 1, %s2721_s26  }
  0x20   : > { %s2849_s17 = scalar_select %p30_p8, %s2721_s26, %s32_s14  }
  0x21   : > { %p41_p12 = por %p40_p9, %p39_p7  ;;  %p2853_p13 = por %p46_p1, %p45_p10 }
  0x22   : > { %s2335_s19 = sshll.u32 %s2725_s27, 8  ;;  %s2058_s20 = sshll.u32 %s2858_s15, 8 }
  0x23   : > { %s283_s24 = scalar_lea.hbm %s3117_s0, %s2335_s19  ;;  %s278_s28 = scalar_lea.vmem [#allocation3], %s2058_s20 }
  0x24   : > { %s285_s23 = sshll.u32 %s283_s24, 4  ;;  %s287_s29 = sshll.u32 %s278_s28, 4  ;;  %s286_s23 = int_to_ptr.hbm [resolvable:$true] %s285_s23  ;;  %s288_s29 = int_to_ptr.vmem [resolvable:$true] %s287_s29 }
  0x25   : > { %p2867_p0 = pnand %p2445_p11, %p41_p12  ;;  %s2061_s10 = sshll.u32 %s2858_s15, 9 }
  0x26   : > { %s303_s14 = scalar_lea.hbm %s3118_s1, %s2335_s19  ;;  %s275_s21 = scalar_lea.sflag [#allocation4], %s2858_s15 }
  0x27   : > { %s304_s16 = sshll.u32 %s303_s14, 4  ;;  %s2615_s22 = sshra.s32 %s286_s23, 4  ;;  %s2616_s22 = int_to_ptr.hbm [resolvable:$true] %s2615_s22  ;;  %s305_s16 = int_to_ptr.hbm [resolvable:$true] %s304_s16 }
  0x28   : > { %s2617_s20 = scalar_lea.hbm %s2616_s22, 256  ;;  %p2619_p5 = pneg %p2867_p0 }
  0x29   : > { %p2618_p2 = scmp.ne.s32.totalorder %s2616_s22, %s2617_s20  ;;  %s2622_s2 = scalar_lea.hbm %s3117_s0, 2048 }
  0x2a   : > { %p2623_p8 = scmp.lt.s32.totalorder %s2616_s22, %s3117_s0  ;;  %p2624_p9 = scmp.lt.s32.totalorder %s2622_s2, %s2617_s20 }
  0x2b   : > { %p2620_p6 = pnand %p2619_p5, %p2618_p2 }
  0x2c   : > { %p2625_p10 = por %p2624_p9, %p2623_p8 }
  0x2d   : > { %p2621_p7 = pneg %p2620_p6 }
  0x2f   : > { %p2626_p11 = pnand %p2625_p10, %p2621_p7 }
  0x31   : > { %2629 = shalt.err (!%p2626_p11)
}
  0x32   : > { %2437 = dma.hbm_to_vmem [thread:$0]  (!%p2867_p0), %s286_s23, 4096, %s288_s29, %s275_s21  }
  0x33   : > { %s298_s15 = scalar_lea.vmem [#allocation5], %s2061_s10  ;;  %s294_s11 = sand.u32 1, %s2725_s27  }
  0x34   : > { %s306_s19 = sshll.u32 %s298_s15, 4  ;;  %s295_s12 = scalar_lea.sflag [#allocation6], %s294_s11  ;;  %s307_s19 = int_to_ptr.vmem [resolvable:$true] %s306_s19 }
  0x35   : > { %s2645_s14 = sshra.s32 %s305_s16, 4  ;;  %s2652_s4 = scalar_lea.hbm %s3118_s1, 4096  ;;  %s2646_s14 = int_to_ptr.hbm [resolvable:$true] %s2645_s14 }
  0x36   : > { %s2647_s24 = scalar_lea.hbm %s2646_s14, 512  ;;  %p2653_p7 = scmp.lt.s32.totalorder %s2646_s14, %s3118_s1 }
  0x37   : > { %p2648_p12 = scmp.ne.s32.totalorder %s2646_s14, %s2647_s24  ;;  %p2654_p8 = scmp.lt.s32.totalorder %s2652_s4, %s2647_s24 }
  0x39   : > { %p2650_p2 = pnand %p2648_p12, %p2619_p5  ;;  %p2655_p9 = por %p2654_p8, %p2653_p7 }
  0x3b   : > { %p2651_p6 = pneg %p2650_p2 }
  0x3d   : > { %p2656_p10 = pnand %p2655_p9, %p2651_p6 }
  0x3f   : > { %2659 = shalt.err (!%p2656_p10)
}
  0x40   : > { %s2733_s27 = smov 32768   ;;  %s2734_s29 = smov 4096  }
  0x41   : > { %s2735_s10 = smov 256   ;;  %318 = sbr.rel (%p2807_p4) target bundleno = 752 (0x2f0), region = 48 }
  0x42   : > { %2440 = dma.hbm_to_vmem [thread:$0]  (!%p2867_p0), %s305_s16, 8192, %s307_s19, %s295_s12, %s2733_s27, %s2734_s29, %s2735_s10  }
  0x43   : > { %s320_s21 = sand.u32 (!%p2807_p4), 1, %s2717_s25  }
  0x44   : > { %s2065_s20 = sshll.u32 (!%p2807_p4), %s320_s21, 8  ;;  %s321_s28 = scalar_lea.sflag (!%p2807_p4), [#allocation4], %s320_s21 }
  0x45   : > { %s2904_s15 = scalar_lea.vmem (!%p2807_p4), [#allocation3], %s2065_s20 }
  0x46   : > { %2692 = dma.done.wait (%p2853_p13), %s321_s28, 4096  }
  0x47   : > { %2694 = vsyncadd (%p2853_p13), %s321_s28, 4294963200  ;;  %s330_s11 = sand.u32 1, %s2801_s8   ;;  %s2066_s30 = sshll.u32 %s320_s21, 9 }
  0x48   : > { %s331_s16 = scalar_lea.sflag [#allocation6], %s330_s11  ;;  %s2911_s19 = scalar_lea.vmem [#allocation5], %s2066_s30 }
  0x49   : > { %2696 = dma.done.wait (%p2853_p13), %s331_s16, 8192  }
  0x4a   : > { %2698 = vsyncadd (%p2853_p13), %s331_s16, 4294959104 }
  0x4b   : > { %2700 = dma.done.wait (%p46_p1), [#allocation6], 16  }
  0x4c   : > { %2702 = vsyncadd (%p46_p1), [#allocation6], 4294967280 }
  0x4d   : > { %2704 = dma.done.wait (%p46_p1), [#allocation9], 272  }
  0x4e   : > { %2706 = vsyncadd (%p46_p1), [#allocation9], 4294967024 }
  0x4f   : > { %2708 = dma.done.wait (%p46_p1), [#allocation12], 16  }
  0x50   : > { %2710 = vsyncadd (%p46_p1), [#allocation12], 4294967280  ;;  %392 = sbr.rel (%p2053_p3) target bundleno = 87 (0x57), region = 76 }
  0x55   : > { %vm393_vm0 = vcmask 80896   ;;  %v2736_v0 = vmov 0.0  }
  0x56   : > { %394 = vst.msk [vmem:[#allocation2] sm:$0xff] %vm393_vm0, %v2736_v0 }
  0x57 PF: > { %v2074_v1 = vld [vmem:[%s2911_s19] sm:$0xf]  ;;  %v2337_v3 = vld [vmem:[%s2911_s19 + $0x4] sm:$0xf]  ;;  %v2082_v6 = vld [vmem:[%s2911_s19 + $0x8] sm:$0xf] }
  0x58   : > { %v2369_v2 = vld [vmem:[%s2911_s19 + $0xfc] sm:$0x10]  ;;  %v2076_v5 = vld [vmem:[%s2911_s19 + $0x100] sm:$0x10]  ;;  %v2370_v7 = vld [vmem:[%s2911_s19 + $0x104] sm:$0x10] }
  0x59   : > { %v2075_v4 = vor.u32 %v2369_v2, %v2074_v1  ;;  %v2079_v8 = vor.u32 %v2337_v3, %v2076_v5  ;;  %v2083_v9 = vor.u32 %v2370_v7, %v2082_v6  ;;  %v2338_v10 = vld [vmem:[%s2911_s19 + $0xc] sm:$0xf]  ;;  %v396_v12 = vld [vmem:[%s2904_s15] sm:$0xff]  ;;  %v2098_v17 = vld [vmem:[%s2911_s19 + $0x18] sm:$0xf]  ;;  %vm1869_vm1 = vcmask 80896  }
  0x5a   : > { %v2084_v11 = vld [vmem:[%s2911_s19 + $0x108] sm:$0x10]  ;;  %v524_v14 = vunpack.c.l.b16 %v396_v12  ;;  %v525_v15 = vunpack.c.h.b16 %v396_v12  ;;  %v2372_v18 = vld [vmem:[%s2911_s19 + $0x114] sm:$0x10]  ;;  %v2340_v22 = vld [vmem:[%s2911_s19 + $0x1c] sm:$0xf] }
  0x5b   : > { %1043 = vmatpush.bf16.xpose.msra.mxu0 %v2075_v4  ;;  %v2087_v13 = vor.u32 %v2338_v10, %v2084_v11  ;;  %v397_v16 = vld [vmem:[%s2904_s15 + $0x8] sm:$0xff]  ;;  %1056 = vmatpush.bf16.xpose.msra.mxu1 %v2079_v8  ;;  %v2099_v21 = vor.u32 %v2372_v18, %v2098_v17  ;;  %v2100_v23 = vld [vmem:[%s2911_s19 + $0x118] sm:$0x10]  ;;  %v2090_v24 = vld [vmem:[%s2911_s19 + $0x10] sm:$0xf]  ;;  %p2328_p1 = scmp.ne.s32.totalorder %s2801_s8, 7 }
  0x5c   : > { %1069 = vmatpush.bf16.xpose.msra.mxu2 %v2083_v9  ;;  %v526_v19 = vunpack.c.l.b16 %v397_v16  ;;  %v527_v20 = vunpack.c.h.b16 %v397_v16  ;;  %v2103_v25 = vor.u32 %v2340_v22, %v2100_v23  ;;  %v2371_v26 = vld [vmem:[%s2911_s19 + $0x10c] sm:$0x10]  ;;  %v2339_v27 = vld [vmem:[%s2911_s19 + $0x14] sm:$0xf]  ;;  %v588_v29 = vpack.c.b16 %v524_v14, %v524_v14  ;;  %v2114_v32 = vld [vmem:[%s2911_s19 + $0x28] sm:$0xf] }
  0x5d   : > { %1082 = vmatpush.bf16.xpose.msra.mxu3 %v2087_v13  ;;  %v2092_v28 = vld [vmem:[%s2911_s19 + $0x110] sm:$0x10]  ;;  %v2091_v30 = vor.u32 %v2371_v26, %v2090_v24  ;;  %v589_v33 = vpack.c.b16 %v525_v15, %v525_v15  ;;  %v2374_v35 = vld [vmem:[%s2911_s19 + $0x124] sm:$0x10]  ;;  %v2342_v36 = vld [vmem:[%s2911_s19 + $0x2c] sm:$0xf] }
  0x5e   : > { %v2095_v31 = vor.u32 %v2339_v27, %v2092_v28  ;;  %v590_v34 = vpack.c.b16 %v526_v19, %v526_v19  ;;  %v2116_v37 = vld [vmem:[%s2911_s19 + $0x128] sm:$0x10]  ;;  %v591_v38 = vpack.c.b16 %v527_v20, %v527_v20  ;;  %v2115_v39 = vor.u32 %v2374_v35, %v2114_v32  ;;  %v2106_v40 = vld [vmem:[%s2911_s19 + $0x20] sm:$0xf]  ;;  %v2341_v42 = vld [vmem:[%s2911_s19 + $0x24] sm:$0xf] }
  0x5f   : > { %v2373_v41 = vld [vmem:[%s2911_s19 + $0x11c] sm:$0x10]  ;;  %v2119_v43 = vor.u32 %v2342_v36, %v2116_v37  ;;  %v2108_v44 = vld [vmem:[%s2911_s19 + $0x120] sm:$0x10]  ;;  %v398_v47 = vld [vmem:[%s2904_s15 + $0x10] sm:$0xff] }
  0x60   : > { %v2107_v45 = vor.u32 %v2373_v41, %v2106_v40  ;;  %v2111_v46 = vor.u32 %v2341_v42, %v2108_v44  ;;  %v399_v48 = vld [vmem:[%s2904_s15 + $0x18] sm:$0xff]  ;;  %v528_v49 = vunpack.c.l.b16 %v398_v47  ;;  %v529_v50 = vunpack.c.h.b16 %v398_v47  ;;  %v2122_v58 = vld [vmem:[%s2911_s19 + $0x30] sm:$0xf]  ;;  %v2343_v62 = vld [vmem:[%s2911_s19 + $0x34] sm:$0xf] }
  0x61   : > { %v530_v51 = vunpack.c.l.b16 %v399_v48  ;;  %v531_v52 = vunpack.c.h.b16 %v399_v48  ;;  %v2130_v53 = vld [vmem:[%s2911_s19 + $0x38] sm:$0xf]  ;;  %v2344_v55 = vld [vmem:[%s2911_s19 + $0x3c] sm:$0xf]  ;;  %v2375_v59 = vld [vmem:[%s2911_s19 + $0x12c] sm:$0x10] }
  0x62   : > { %1044 = vmatmul.bf16.vlgmr.msra.gmra.mxu0 %v588_v29  ;;  %1057 = vmatmul.bf16.vlgmr.msra.gmra.mxu1 %v589_v33  ;;  %v2376_v54 = vld [vmem:[%s2911_s19 + $0x134] sm:$0x10]  ;;  %v592_v56 = vpack.c.b16 %v528_v49, %v528_v49  ;;  %v2132_v57 = vld [vmem:[%s2911_s19 + $0x138] sm:$0x10]  ;;  %v593_v60 = vpack.c.b16 %v529_v50, %v529_v50  ;;  %v2124_v63 = vld [vmem:[%s2911_s19 + $0x130] sm:$0x10]  ;;  %v2123_v3 = vor.u32 %v2375_v59, %v2122_v58 }
  0x63   : > { %1095 = vmatpush.bf16.xpose.msrb.mxu0 %v2091_v30  ;;  %1108 = vmatpush.bf16.xpose.msrb.mxu1 %v2095_v31  ;;  %v594_v61 = vpack.c.b16 %v530_v51, %v530_v51  ;;  %v595_v0 = vpack.c.b16 %v531_v52, %v531_v52  ;;  %v2131_v1 = vor.u32 %v2376_v54, %v2130_v53  ;;  %v400_v5 = vld [vmem:[%s2904_s15 + $0x20] sm:$0xff]  ;;  %v401_v6 = vld [vmem:[%s2904_s15 + $0x28] sm:$0xff]  ;;  %v402_v27 = vld [vmem:[%s2904_s15 + $0x30] sm:$0xff] }
  0x64   : > { %1121 = vmatpush.bf16.xpose.msrb.mxu2 %v2099_v21  ;;  %1083 = vmatmul.bf16.vlgmr.msra.gmra.mxu3 %v591_v38  ;;  %v2135_v2 = vor.u32 %v2344_v55, %v2132_v57  ;;  %v2127_v4 = vor.u32 %v2343_v62, %v2124_v63  ;;  %v532_v7 = vunpack.c.l.b16 %v400_v5  ;;  %v533_v8 = vunpack.c.h.b16 %v400_v5  ;;  %v2146_v11 = vld [vmem:[%s2911_s19 + $0x48] sm:$0xf]  ;;  %v2346_v13 = vld [vmem:[%s2911_s19 + $0x4c] sm:$0xf]  ;;  %v2138_v16 = vld [vmem:[%s2911_s19 + $0x40] sm:$0xf] }
  0x65   : > { %1134 = vmatpush.bf16.xpose.msrb.mxu3 %v2103_v25  ;;  %1070 = vmatmul.bf16.vlgmr.msra.gmra.mxu2 %v590_v34  ;;  %v534_v9 = vunpack.c.l.b16 %v401_v6  ;;  %v535_v10 = vunpack.c.h.b16 %v401_v6  ;;  %v2378_v12 = vld [vmem:[%s2911_s19 + $0x144] sm:$0x10]  ;;  %v2148_v15 = vld [vmem:[%s2911_s19 + $0x148] sm:$0x10]  ;;  %v2377_v17 = vld [vmem:[%s2911_s19 + $0x13c] sm:$0x10]  ;;  %v536_v29 = vunpack.c.l.b16 %v402_v27  ;;  %v537_v30 = vunpack.c.h.b16 %v402_v27 }
  0x66   : > { %v596_v14 = vpack.c.b16 %v532_v7, %v532_v7  ;;  %v597_v18 = vpack.c.b16 %v533_v8, %v533_v8  ;;  %v2345_v20 = vld [vmem:[%s2911_s19 + $0x44] sm:$0xf]  ;;  %v2147_v23 = vor.u32 %v2378_v12, %v2146_v11  ;;  %v2151_v24 = vor.u32 %v2346_v13, %v2148_v15  ;;  %v403_v28 = vld [vmem:[%s2904_s15 + $0x38] sm:$0xff]  ;;  %v2154_v38 = vld [vmem:[%s2911_s19 + $0x50] sm:$0xf] }
  0x67   : > { %v598_v19 = vpack.c.b16 %v534_v9, %v534_v9  ;;  %v2140_v21 = vld [vmem:[%s2911_s19 + $0x140] sm:$0x10]  ;;  %v599_v22 = vpack.c.b16 %v535_v10, %v535_v10  ;;  %v2139_v25 = vor.u32 %v2377_v17, %v2138_v16  ;;  %v538_v31 = vunpack.c.l.b16 %v403_v28  ;;  %v2162_v33 = vld [vmem:[%s2911_s19 + $0x58] sm:$0xf]  ;;  %v2348_v35 = vld [vmem:[%s2911_s19 + $0x5c] sm:$0xf] }
  0x68   : > { %v2143_v26 = vor.u32 %v2345_v20, %v2140_v21  ;;  %v539_v32 = vunpack.c.h.b16 %v403_v28  ;;  %v2380_v34 = vld [vmem:[%s2911_s19 + $0x154] sm:$0x10]  ;;  %v600_v36 = vpack.c.b16 %v536_v29, %v536_v29  ;;  %v2164_v37 = vld [vmem:[%s2911_s19 + $0x158] sm:$0x10]  ;;  %v601_v40 = vpack.c.b16 %v537_v30, %v537_v30  ;;  %v2347_v42 = vld [vmem:[%s2911_s19 + $0x54] sm:$0xf] }
  0x69   : > { %v602_v41 = vpack.c.b16 %v538_v31, %v538_v31  ;;  %v404_v49 = vld [vmem:[%s2904_s15 + $0x40] sm:$0xff]  ;;  %v405_v50 = vld [vmem:[%s2904_s15 + $0x48] sm:$0xff]  ;;  %v406_v7 = vld [vmem:[%s2904_s15 + $0x50] sm:$0xff] }
  0x6a   : > { %v603_v44 = vpack.c.b16 %v539_v32, %v539_v32  ;;  %v540_v51 = vunpack.c.l.b16 %v404_v49  ;;  %v541_v52 = vunpack.c.h.b16 %v404_v49  ;;  %v542_v53 = vunpack.c.l.b16 %v405_v50  ;;  %v2178_v55 = vld [vmem:[%s2911_s19 + $0x68] sm:$0xf]  ;;  %v2350_v57 = vld [vmem:[%s2911_s19 + $0x6c] sm:$0xf]  ;;  %v407_v8 = vld [vmem:[%s2904_s15 + $0x58] sm:$0xff] }
  0x6b   : > { %1147 = vmatpush.bf16.xpose.msra.mxu0 %v2107_v45  ;;  %1160 = vmatpush.bf16.xpose.msra.mxu1 %v2111_v46  ;;  %v2163_v45 = vor.u32 %v2380_v34, %v2162_v33  ;;  %v2167_v46 = vor.u32 %v2348_v35, %v2164_v37  ;;  %v543_v54 = vunpack.c.h.b16 %v405_v50  ;;  %v2180_v59 = vld [vmem:[%s2911_s19 + $0x168] sm:$0x10]  ;;  %v544_v9 = vunpack.c.l.b16 %v406_v7  ;;  %v2194_v13 = vld [vmem:[%s2911_s19 + $0x78] sm:$0xf]  ;;  %v2352_v15 = vld [vmem:[%s2911_s19 + $0x7c] sm:$0xf] }
  0x6c   : > { %1173 = vmatpush.bf16.xpose.msra.mxu2 %v2115_v39  ;;  %v2379_v39 = vld [vmem:[%s2911_s19 + $0x14c] sm:$0x10]  ;;  %v604_v58 = vpack.c.b16 %v540_v51, %v540_v51  ;;  %v605_v62 = vpack.c.b16 %v541_v52, %v541_v52  ;;  %v606_v63 = vpack.c.b16 %v542_v53, %v542_v53  ;;  %v545_v10 = vunpack.c.h.b16 %v406_v7  ;;  %v2196_v17 = vld [vmem:[%s2911_s19 + $0x178] sm:$0x10]  ;;  %v408_v29 = vld [vmem:[%s2904_s15 + $0x60] sm:$0xff] }
  0x6d   : > { %1186 = vmatpush.bf16.xpose.msra.mxu3 %v2119_v43  ;;  %v2156_v43 = vld [vmem:[%s2911_s19 + $0x150] sm:$0x10]  ;;  %v2155_v47 = vor.u32 %v2379_v39, %v2154_v38  ;;  %v546_v11 = vunpack.c.l.b16 %v407_v8  ;;  %v547_v12 = vunpack.c.h.b16 %v407_v8  ;;  %v608_v16 = vpack.c.b16 %v544_v9, %v544_v9  ;;  %v409_v30 = vld [vmem:[%s2904_s15 + $0x68] sm:$0xff]  ;;  %v411_v52 = vld [vmem:[%s2904_s15 + $0x78] sm:$0xff] }
  0x6e   : > { %v2159_v48 = vor.u32 %v2347_v42, %v2156_v43  ;;  %v609_v20 = vpack.c.b16 %v545_v10, %v545_v10  ;;  %v548_v31 = vunpack.c.l.b16 %v408_v29  ;;  %v549_v32 = vunpack.c.h.b16 %v408_v29  ;;  %v2210_v35 = vld [vmem:[%s2911_s19 + $0x88] sm:$0xf]  ;;  %v2354_v37 = vld [vmem:[%s2911_s19 + $0x8c] sm:$0xf]  ;;  %v410_v51 = vld [vmem:[%s2904_s15 + $0x70] sm:$0xff] }
  0x6f   : > { %v610_v21 = vpack.c.b16 %v546_v11, %v546_v11  ;;  %v550_v33 = vunpack.c.l.b16 %v409_v30  ;;  %v551_v34 = vunpack.c.h.b16 %v409_v30  ;;  %v2212_v39 = vld [vmem:[%s2911_s19 + $0x188] sm:$0x10]  ;;  %v552_v53 = vunpack.c.l.b16 %v410_v51  ;;  %v412_v9 = vld [vmem:[%s2904_s15 + $0x80] sm:$0xff] }
  0x70   : > { %v612_v38 = vpack.c.b16 %v548_v31, %v548_v31  ;;  %v613_v42 = vpack.c.b16 %v549_v32, %v549_v32  ;;  %v413_v10 = vld [vmem:[%s2904_s15 + $0x88] sm:$0xff]  ;;  %v556_v11 = vunpack.c.l.b16 %v412_v9 }
  0x71   : > { %v614_v43 = vpack.c.b16 %v550_v33, %v550_v33 }
  0x72   : > { %1096 = vmatmul.bf16.vlgmr.msrb.gmra.mxu0 %v592_v56  ;;  %1109 = vmatmul.bf16.vlgmr.msrb.gmra.mxu1 %v593_v60  ;;  %v2382_v56 = vld [vmem:[%s2911_s19 + $0x164] sm:$0x10]  ;;  %v2170_v60 = vld [vmem:[%s2911_s19 + $0x60] sm:$0xf] }
  0x73   : > { %1199 = vmatpush.bf16.xpose.msrb.mxu0 %v2123_v3  ;;  %1212 = vmatpush.bf16.xpose.msrb.mxu1 %v2127_v4  ;;  %v2179_v3 = vor.u32 %v2382_v56, %v2178_v55  ;;  %v2183_v4 = vor.u32 %v2350_v57, %v2180_v59  ;;  %v554_v55 = vunpack.c.l.b16 %v411_v52  ;;  %v555_v56 = vunpack.c.h.b16 %v411_v52  ;;  %v2226_v57 = vld [vmem:[%s2911_s19 + $0x98] sm:$0xf]  ;;  %v2356_v59 = vld [vmem:[%s2911_s19 + $0x9c] sm:$0xf]  ;;  %v2250_v52 = vld [vmem:[%s2911_s19 + $0xb0] sm:$0xf] }
  0x74   : > { %1135 = vmatmul.bf16.vlgmr.msrb.gmra.mxu3 %v595_v0  ;;  %v2349_v0 = vld [vmem:[%s2911_s19 + $0x64] sm:$0xf] }
  0x75   : > { %1122 = vmatmul.bf16.vlgmr.msrb.gmra.mxu2 %v594_v61  ;;  %1238 = vmatpush.bf16.xpose.msrb.mxu3 %v2135_v2  ;;  %v2381_v61 = vld [vmem:[%s2911_s19 + $0x15c] sm:$0x10]  ;;  %v607_v2 = vpack.c.b16 %v543_v54, %v543_v54  ;;  %v553_v54 = vunpack.c.h.b16 %v410_v51  ;;  %v2260_v51 = vld [vmem:[%s2911_s19 + $0x1b8] sm:$0x10] }
  0x76   : > { %1225 = vmatpush.bf16.xpose.msrb.mxu2 %v2131_v1  ;;  %v2172_v1 = vld [vmem:[%s2911_s19 + $0x160] sm:$0x10]  ;;  %v2171_v5 = vor.u32 %v2381_v61, %v2170_v60  ;;  %v616_v60 = vpack.c.b16 %v552_v53, %v552_v53  ;;  %v2228_v61 = vld [vmem:[%s2911_s19 + $0x198] sm:$0x10]  ;;  %v2391_v53 = vld [vmem:[%s2911_s19 + $0x1ac] sm:$0x10] }
  0x77   : > { %v2175_v6 = vor.u32 %v2349_v0, %v2172_v1  ;;  %v617_v0 = vpack.c.b16 %v553_v54, %v553_v54  ;;  %v618_v1 = vpack.c.b16 %v554_v55, %v554_v55 }
  0x82   : > { %1148 = vmatmul.bf16.vlgmr.msra.gmra.mxu0 %v596_v14  ;;  %1161 = vmatmul.bf16.vlgmr.msra.gmra.mxu1 %v597_v18  ;;  %v2384_v14 = vld [vmem:[%s2911_s19 + $0x174] sm:$0x10]  ;;  %v2186_v18 = vld [vmem:[%s2911_s19 + $0x70] sm:$0xf] }
  0x83   : > { %1251 = vmatpush.bf16.xpose.msra.mxu0 %v2139_v25  ;;  %1264 = vmatpush.bf16.xpose.msra.mxu1 %v2143_v26  ;;  %v2195_v25 = vor.u32 %v2384_v14, %v2194_v13  ;;  %v2199_v26 = vor.u32 %v2352_v15, %v2196_v17  ;;  %v558_v13 = vunpack.c.l.b16 %v413_v10  ;;  %v559_v14 = vunpack.c.h.b16 %v413_v10  ;;  %v2242_v15 = vld [vmem:[%s2911_s19 + $0xa8] sm:$0xf]  ;;  %v2358_v17 = vld [vmem:[%s2911_s19 + $0xac] sm:$0xf] }
  0x84   : > { %1187 = vmatmul.bf16.vlgmr.msra.gmra.mxu3 %v599_v22  ;;  %v2351_v22 = vld [vmem:[%s2911_s19 + $0x74] sm:$0xf]  ;;  %v417_v10 = vld [vmem:[%s2904_s15 + $0xa8] sm:$0xff] }
  0x85   : > { %1174 = vmatmul.bf16.vlgmr.msra.gmra.mxu2 %v598_v19  ;;  %1290 = vmatpush.bf16.xpose.msra.mxu3 %v2151_v24  ;;  %v2383_v19 = vld [vmem:[%s2911_s19 + $0x16c] sm:$0x10]  ;;  %v611_v24 = vpack.c.b16 %v547_v12, %v547_v12  ;;  %v557_v12 = vunpack.c.h.b16 %v412_v9 }
  0x86   : > { %1277 = vmatpush.bf16.xpose.msra.mxu2 %v2147_v23  ;;  %v2188_v23 = vld [vmem:[%s2911_s19 + $0x170] sm:$0x10]  ;;  %v2187_v27 = vor.u32 %v2383_v19, %v2186_v18  ;;  %v620_v18 = vpack.c.b16 %v556_v11, %v556_v11  ;;  %v2244_v19 = vld [vmem:[%s2911_s19 + $0x1a8] sm:$0x10] }
  0x87   : > { %v2191_v28 = vor.u32 %v2351_v22, %v2188_v23  ;;  %v621_v23 = vpack.c.b16 %v557_v12, %v557_v12  ;;  %v2247_v31 = vor.u32 %v2358_v17, %v2244_v19  ;;  %v2394_v17 = vld [vmem:[%s2911_s19 + $0x1c4] sm:$0x10] }
  0x92   : > { %1200 = vmatmul.bf16.vlgmr.msrb.gmra.mxu0 %v600_v36  ;;  %1213 = vmatmul.bf16.vlgmr.msrb.gmra.mxu1 %v601_v40  ;;  %v2386_v36 = vld [vmem:[%s2911_s19 + $0x184] sm:$0x10]  ;;  %v2202_v40 = vld [vmem:[%s2911_s19 + $0x80] sm:$0xf] }
  0x93   : > { %1303 = vmatpush.bf16.xpose.msrb.mxu0 %v2155_v47  ;;  %1316 = vmatpush.bf16.xpose.msrb.mxu1 %v2159_v48  ;;  %v2211_v47 = vor.u32 %v2386_v36, %v2210_v35  ;;  %v2215_v48 = vor.u32 %v2354_v37, %v2212_v39 }
  0x94   : > { %1239 = vmatmul.bf16.vlgmr.msrb.gmra.mxu3 %v603_v44  ;;  %v2353_v44 = vld [vmem:[%s2911_s19 + $0x84] sm:$0xf] }
  0x95   : > { %1226 = vmatmul.bf16.vlgmr.msrb.gmra.mxu2 %v602_v41  ;;  %1342 = vmatpush.bf16.xpose.msrb.mxu3 %v2167_v46  ;;  %v2385_v41 = vld [vmem:[%s2911_s19 + $0x17c] sm:$0x10]  ;;  %v615_v46 = vpack.c.b16 %v551_v34, %v551_v34 }
  0x96   : > { %1329 = vmatpush.bf16.xpose.msrb.mxu2 %v2163_v45  ;;  %v2204_v45 = vld [vmem:[%s2911_s19 + $0x180] sm:$0x10]  ;;  %v2203_v49 = vor.u32 %v2385_v41, %v2202_v40  ;;  %v415_v40 = vld [vmem:[%s2904_s15 + $0x98] sm:$0xff] }
  0x97   : > { %v2207_v50 = vor.u32 %v2353_v44, %v2204_v45  ;;  %v562_v44 = vunpack.c.l.b16 %v415_v40  ;;  %v563_v45 = vunpack.c.h.b16 %v415_v40 }
  0xa2   : > { %1252 = vmatmul.bf16.vlgmr.msra.gmra.mxu0 %v604_v58  ;;  %1265 = vmatmul.bf16.vlgmr.msra.gmra.mxu1 %v605_v62  ;;  %v2388_v58 = vld [vmem:[%s2911_s19 + $0x194] sm:$0x10]  ;;  %v2218_v62 = vld [vmem:[%s2911_s19 + $0x90] sm:$0xf] }
  0xa3   : > { %1355 = vmatpush.bf16.xpose.msra.mxu0 %v2171_v5  ;;  %1368 = vmatpush.bf16.xpose.msra.mxu1 %v2175_v6  ;;  %v2227_v5 = vor.u32 %v2388_v58, %v2226_v57  ;;  %v2231_v6 = vor.u32 %v2356_v59, %v2228_v61  ;;  %v626_v57 = vpack.c.b16 %v562_v44, %v562_v44  ;;  %v2359_v58 = vld [vmem:[%s2911_s19 + $0xb4] sm:$0xf]  ;;  %v419_v44 = vld [vmem:[%s2904_s15 + $0xb8] sm:$0xff] }
  0xa4   : > { %1291 = vmatmul.bf16.vlgmr.msra.gmra.mxu3 %v607_v2  ;;  %v2355_v2 = vld [vmem:[%s2911_s19 + $0x94] sm:$0xf] }
  0xa5   : > { %1278 = vmatmul.bf16.vlgmr.msra.gmra.mxu2 %v606_v63  ;;  %1394 = vmatpush.bf16.xpose.msra.mxu3 %v2183_v4  ;;  %v2387_v63 = vld [vmem:[%s2911_s19 + $0x18c] sm:$0x10]  ;;  %v619_v4 = vpack.c.b16 %v555_v56, %v555_v56  ;;  %v2252_v59 = vld [vmem:[%s2911_s19 + $0x1b0] sm:$0x10] }
  0xa6   : > { %1381 = vmatpush.bf16.xpose.msra.mxu2 %v2179_v3  ;;  %v2220_v3 = vld [vmem:[%s2911_s19 + $0x190] sm:$0x10]  ;;  %v2219_v7 = vor.u32 %v2387_v63, %v2218_v62  ;;  %v627_v62 = vpack.c.b16 %v563_v45, %v563_v45 }
  0xa7   : > { %v2223_v8 = vor.u32 %v2355_v2, %v2220_v3  ;;  %v2255_v3 = vor.u32 %v2359_v58, %v2252_v59 }
  0xb2   : > { %1304 = vmatmul.bf16.vlgmr.msrb.gmra.mxu0 %v608_v16  ;;  %1317 = vmatmul.bf16.vlgmr.msrb.gmra.mxu1 %v609_v20  ;;  %v2390_v16 = vld [vmem:[%s2911_s19 + $0x1a4] sm:$0x10]  ;;  %v2234_v20 = vld [vmem:[%s2911_s19 + $0xa0] sm:$0xf] }
  0xb3   : > { %1407 = vmatpush.bf16.xpose.msrb.mxu0 %v2187_v27  ;;  %1420 = vmatpush.bf16.xpose.msrb.mxu1 %v2191_v28  ;;  %v623_v28 = vpack.c.b16 %v559_v14, %v559_v14  ;;  %v2243_v29 = vor.u32 %v2390_v16, %v2242_v15  ;;  %v566_v14 = vunpack.c.l.b16 %v417_v10  ;;  %v567_v15 = vunpack.c.h.b16 %v417_v10  ;;  %v2274_v16 = vld [vmem:[%s2911_s19 + $0xc8] sm:$0xf] }
  0xb4   : > { %1343 = vmatmul.bf16.vlgmr.msrb.gmra.mxu3 %v611_v24  ;;  %v622_v24 = vpack.c.b16 %v558_v13, %v558_v13 }
  0xb5   : > { %1330 = vmatmul.bf16.vlgmr.msrb.gmra.mxu2 %v610_v21  ;;  %1446 = vmatpush.bf16.xpose.msrb.mxu3 %v2199_v26  ;;  %v2389_v21 = vld [vmem:[%s2911_s19 + $0x19c] sm:$0x10]  ;;  %v2236_v26 = vld [vmem:[%s2911_s19 + $0x1a0] sm:$0x10] }
  0xb6   : > { %1433 = vmatpush.bf16.xpose.msrb.mxu2 %v2195_v25  ;;  %v2357_v25 = vld [vmem:[%s2911_s19 + $0xa4] sm:$0xf]  ;;  %v2235_v32 = vor.u32 %v2389_v21, %v2234_v20  ;;  %v2276_v21 = vld [vmem:[%s2911_s19 + $0x1c8] sm:$0x10] }
  0xb7   : > { %v2239_v33 = vor.u32 %v2357_v25, %v2236_v26 }
  0xc2   : > { %1356 = vmatmul.bf16.vlgmr.msra.gmra.mxu0 %v612_v38  ;;  %1369 = vmatmul.bf16.vlgmr.msra.gmra.mxu1 %v613_v42  ;;  %v414_v38 = vld [vmem:[%s2904_s15 + $0x90] sm:$0xff] }
  0xc3   : > { %1459 = vmatpush.bf16.xpose.msra.mxu0 %v2203_v49  ;;  %1472 = vmatpush.bf16.xpose.msra.mxu1 %v2207_v50  ;;  %v560_v42 = vunpack.c.l.b16 %v414_v38 }
  0xc4   : > { %1395 = vmatmul.bf16.vlgmr.msra.gmra.mxu3 %v615_v46  ;;  %v2258_v46 = vld [vmem:[%s2911_s19 + $0xb8] sm:$0xf] }
  0xc5   : > { %1382 = vmatmul.bf16.vlgmr.msra.gmra.mxu2 %v614_v43  ;;  %1498 = vmatpush.bf16.xpose.msra.mxu3 %v2215_v48  ;;  %v561_v43 = vunpack.c.h.b16 %v414_v38  ;;  %v2360_v48 = vld [vmem:[%s2911_s19 + $0xbc] sm:$0xf]  ;;  %v624_v50 = vpack.c.b16 %v560_v42, %v560_v42  ;;  %v418_v42 = vld [vmem:[%s2904_s15 + $0xb0] sm:$0xff] }
  0xc6   : > { %1485 = vmatpush.bf16.xpose.msra.mxu2 %v2211_v47  ;;  %v2392_v47 = vld [vmem:[%s2911_s19 + $0x1b4] sm:$0x10] }
  0xc7   : > { %v625_v56 = vpack.c.b16 %v561_v43, %v561_v43  ;;  %v2259_v63 = vor.u32 %v2392_v47, %v2258_v46  ;;  %v568_v46 = vunpack.c.l.b16 %v418_v42  ;;  %v569_v47 = vunpack.c.h.b16 %v418_v42 }
  0xd2   : > { %1408 = vmatmul.bf16.vlgmr.msrb.gmra.mxu0 %v616_v60  ;;  %1421 = vmatmul.bf16.vlgmr.msrb.gmra.mxu1 %v617_v0  ;;  %v2263_v0 = vor.u32 %v2360_v48, %v2260_v51  ;;  %v570_v48 = vunpack.c.l.b16 %v419_v44  ;;  %v2396_v51 = vld [vmem:[%s2911_s19 + $0x1d4] sm:$0x10] }
  0xd3   : > { %1511 = vmatpush.bf16.xpose.msrb.mxu0 %v2219_v7  ;;  %1524 = vmatpush.bf16.xpose.msrb.mxu1 %v2223_v8  ;;  %v416_v8 = vld [vmem:[%s2904_s15 + $0xa0] sm:$0xff] }
  0xd4   : > { %1447 = vmatmul.bf16.vlgmr.msrb.gmra.mxu3 %v619_v4  ;;  %v564_v12 = vunpack.c.l.b16 %v416_v8  ;;  %v565_v13 = vunpack.c.h.b16 %v416_v8 }
  0xd5   : > { %1434 = vmatmul.bf16.vlgmr.msrb.gmra.mxu2 %v618_v1  ;;  %1550 = vmatpush.bf16.xpose.msrb.mxu3 %v2231_v6  ;;  %v2251_v1 = vor.u32 %v2391_v53, %v2250_v52  ;;  %v2364_v52 = vld [vmem:[%s2911_s19 + $0xdc] sm:$0xf] }
  0xd6   : > { %1537 = vmatpush.bf16.xpose.msrb.mxu2 %v2227_v5  ;;  %v628_v20 = vpack.c.b16 %v564_v12, %v564_v12  ;;  %v629_v26 = vpack.c.b16 %v565_v13, %v565_v13  ;;  %v420_v12 = vld [vmem:[%s2904_s15 + $0xc0] sm:$0xff] }
  0xdf   : > { %v1045_v22 = vpop.f32.mrf.mxu0  ;;  %v1058_v27 = vpop.f32.mrf.mxu1 }
  0xe0   : > { %v1059_v30 = vadd.f32 %v1058_v27, %v1045_v22  ;;  %v2266_v22 = vld [vmem:[%s2911_s19 + $0xc0] sm:$0xf]  ;;  %v630_v27 = vpack.c.b16 %v566_v14, %v566_v14  ;;  %v421_v14 = vld [vmem:[%s2904_s15 + $0xc8] sm:$0xff] }
  0xe2   : > { %1460 = vmatmul.bf16.vlgmr.msra.gmra.mxu0 %v620_v18  ;;  %1473 = vmatmul.bf16.vlgmr.msra.gmra.mxu1 %v621_v23  ;;  %v2362_v18 = vld [vmem:[%s2911_s19 + $0xcc] sm:$0xf]  ;;  %v2393_v23 = vld [vmem:[%s2911_s19 + $0x1bc] sm:$0x10] }
  0xe3   : > { %1563 = vmatpush.bf16.xpose.msra.mxu0 %v2235_v32  ;;  %1576 = vmatpush.bf16.xpose.msra.mxu1 %v2239_v33  ;;  %v631_v32 = vpack.c.b16 %v567_v15, %v567_v15  ;;  %v2275_v33 = vor.u32 %v2394_v17, %v2274_v16  ;;  %v572_v16 = vunpack.c.l.b16 %v420_v12  ;;  %v573_v17 = vunpack.c.h.b16 %v420_v12 }
  0xe4   : > { %1499 = vmatmul.bf16.vlgmr.msra.gmra.mxu3 %v623_v28  ;;  %v2361_v28 = vld [vmem:[%s2911_s19 + $0xc4] sm:$0xf] }
  0xe5   : > { %1486 = vmatmul.bf16.vlgmr.msra.gmra.mxu2 %v622_v24  ;;  %1602 = vmatpush.bf16.xpose.msra.mxu3 %v2247_v31 }
  0xe6   : > { %1589 = vmatpush.bf16.xpose.msra.mxu2 %v2243_v29  ;;  %v2268_v29 = vld [vmem:[%s2911_s19 + $0x1c0] sm:$0x10] }
  0xe7   : > { %v1084_v36 = vpop.f32.mrf.mxu3  ;;  %v1047_v37 = vpop.f32.mrf.mxu0 }
  0xe8   : > { %v1071_v34 = vpop.f32.mrf.mxu2  ;;  %v1060_v39 = vpop.f32.mrf.mxu1  ;;  %v2271_v37 = vor.u32 %v2361_v28, %v2268_v29 }
  0xe9   : > { %v1072_v35 = vadd.f32 %v1071_v34, %v1059_v30  ;;  %v2279_v34 = vor.u32 %v2362_v18, %v2276_v21  ;;  %v574_v18 = vunpack.c.l.b16 %v421_v14  ;;  %v2398_v21 = vld [vmem:[%s2911_s19 + $0x1e4] sm:$0x10] }
  0xeb   : > { %v1085_v41 = vadd.f32 %v1084_v36, %v1072_v35  ;;  %v2267_v35 = vor.u32 %v2393_v23, %v2266_v22  ;;  %v2366_v22 = vld [vmem:[%s2911_s19 + $0xec] sm:$0xf] }
  0xef   : > { %v1086_v54 = vpop.f32.mrf.mxu3  ;;  %v1097_v55 = vpop.f32.mrf.mxu0 }
  0xf0   : > { %v1073_v49 = vpop.f32.mrf.mxu2  ;;  %v1098_v60 = vadd.f32 %v1097_v55, %v1085_v41  ;;  %v1110_v61 = vpop.f32.mrf.mxu1  ;;  %v632_v54 = vpack.c.b16 %v568_v46, %v568_v46  ;;  %v2292_v55 = vld [vmem:[%s2911_s19 + $0x1d8] sm:$0x10]  ;;  %v422_v46 = vld [vmem:[%s2904_s15 + $0xd0] sm:$0xff] }
  0xf1   : > { %v571_v49 = vunpack.c.h.b16 %v419_v44 }
  0xf2   : > { %v1111_v2 = vadd.f32 %v1110_v61, %v1098_v60  ;;  %1512 = vmatmul.bf16.vlgmr.msrb.gmra.mxu0 %v624_v50  ;;  %1525 = vmatmul.bf16.vlgmr.msrb.gmra.mxu1 %v625_v56  ;;  %v2290_v50 = vld [vmem:[%s2911_s19 + $0xd8] sm:$0xf]  ;;  %v2282_v56 = vld [vmem:[%s2911_s19 + $0xd0] sm:$0xf]  ;;  %v633_v60 = vpack.c.b16 %v569_v47, %v569_v47  ;;  %v634_v61 = vpack.c.b16 %v570_v48, %v570_v48 }
  0xf3   : > { %1615 = vmatpush.bf16.xpose.msrb.mxu0 %v2251_v1  ;;  %1628 = vmatpush.bf16.xpose.msrb.mxu1 %v2255_v3  ;;  %v2291_v3 = vor.u32 %v2396_v51, %v2290_v50  ;;  %v423_v48 = vld [vmem:[%s2904_s15 + $0xd8] sm:$0xff]  ;;  %v576_v50 = vunpack.c.l.b16 %v422_v46  ;;  %v577_v51 = vunpack.c.h.b16 %v422_v46 }
  0xf4   : > { %1551 = vmatmul.bf16.vlgmr.msrb.gmra.mxu3 %v627_v62  ;;  %v2363_v62 = vld [vmem:[%s2911_s19 + $0xd4] sm:$0xf] }
  0xf5   : > { %1538 = vmatmul.bf16.vlgmr.msrb.gmra.mxu2 %v626_v57  ;;  %1654 = vmatpush.bf16.xpose.msrb.mxu3 %v2263_v0  ;;  %v2395_v57 = vld [vmem:[%s2911_s19 + $0x1cc] sm:$0x10] }
  0xf6   : > { %1641 = vmatpush.bf16.xpose.msrb.mxu2 %v2259_v63  ;;  %v2284_v63 = vld [vmem:[%s2911_s19 + $0x1d0] sm:$0x10] }
  0xf7   : > { %v1136_v6 = vpop.f32.mrf.mxu3  ;;  %v1099_v7 = vpop.f32.mrf.mxu0 }
  0xf8   : > { %v1123_v4 = vpop.f32.mrf.mxu2  ;;  %v1112_v9 = vpop.f32.mrf.mxu1  ;;  %v2287_v7 = vor.u32 %v2363_v62, %v2284_v63 }
  0xf9   : > { %v1124_v5 = vadd.f32 %v1123_v4, %v1111_v2  ;;  %v635_v2 = vpack.c.b16 %v571_v49, %v571_v49  ;;  %v2295_v4 = vor.u32 %v2364_v52, %v2292_v55  ;;  %v578_v52 = vunpack.c.l.b16 %v423_v48  ;;  %v2400_v55 = vld [vmem:[%s2911_s19 + $0x1f4] sm:$0x10] }
  0xfb   : > { %v1137_v11 = vadd.f32 %v1136_v6, %v1124_v5  ;;  %v2283_v5 = vor.u32 %v2395_v57, %v2282_v56  ;;  %v2368_v56 = vld [vmem:[%s2911_s19 + $0xfc] sm:$0xf] }
  0xff   : > { %v1138_v24 = vpop.f32.mrf.mxu3  ;;  %v1149_v25 = vpop.f32.mrf.mxu0 }
 0x100   : > { %v1125_v19 = vpop.f32.mrf.mxu2  ;;  %v1150_v30 = vadd.f32 %v1149_v25, %v1137_v11  ;;  %v1162_v31 = vpop.f32.mrf.mxu1  ;;  %v636_v24 = vpack.c.b16 %v572_v16, %v572_v16  ;;  %v2308_v25 = vld [vmem:[%s2911_s19 + $0x1e8] sm:$0x10]  ;;  %v424_v16 = vld [vmem:[%s2904_s15 + $0xe0] sm:$0xff] }
 0x101   : > { %v575_v19 = vunpack.c.h.b16 %v421_v14 }
 0x102   : > { %v1163_v36 = vadd.f32 %v1162_v31, %v1150_v30  ;;  %1564 = vmatmul.bf16.vlgmr.msra.gmra.mxu0 %v628_v20  ;;  %1577 = vmatmul.bf16.vlgmr.msra.gmra.mxu1 %v629_v26  ;;  %v2306_v20 = vld [vmem:[%s2911_s19 + $0xe8] sm:$0xf]  ;;  %v2298_v26 = vld [vmem:[%s2911_s19 + $0xe0] sm:$0xf]  ;;  %v637_v30 = vpack.c.b16 %v573_v17, %v573_v17  ;;  %v638_v31 = vpack.c.b16 %v574_v18, %v574_v18 }
 0x103   : > { %1667 = vmatpush.bf16.xpose.msra.mxu0 %v2267_v35  ;;  %1680 = vmatpush.bf16.xpose.msra.mxu1 %v2271_v37  ;;  %v2307_v37 = vor.u32 %v2398_v21, %v2306_v20  ;;  %v425_v18 = vld [vmem:[%s2904_s15 + $0xe8] sm:$0xff]  ;;  %v580_v20 = vunpack.c.l.b16 %v424_v16  ;;  %v581_v21 = vunpack.c.h.b16 %v424_v16 }
 0x104   : > { %1603 = vmatmul.bf16.vlgmr.msra.gmra.mxu3 %v631_v32  ;;  %v2365_v32 = vld [vmem:[%s2911_s19 + $0xe4] sm:$0xf] }
 0x105   : > { %1590 = vmatmul.bf16.vlgmr.msra.gmra.mxu2 %v630_v27  ;;  %1706 = vmatpush.bf16.xpose.msra.mxu3 %v2279_v34  ;;  %v2397_v27 = vld [vmem:[%s2911_s19 + $0x1dc] sm:$0x10] }
 0x106   : > { %1693 = vmatpush.bf16.xpose.msra.mxu2 %v2275_v33  ;;  %v2300_v33 = vld [vmem:[%s2911_s19 + $0x1e0] sm:$0x10] }
 0x107   : > { %v1188_v40 = vpop.f32.mrf.mxu3  ;;  %v1151_v41 = vpop.f32.mrf.mxu0 }
 0x108   : > { %v1175_v38 = vpop.f32.mrf.mxu2  ;;  %v1164_v43 = vpop.f32.mrf.mxu1  ;;  %v2303_v41 = vor.u32 %v2365_v32, %v2300_v33 }
 0x109   : > { %v1176_v39 = vadd.f32 %v1175_v38, %v1163_v36  ;;  %v639_v36 = vpack.c.b16 %v575_v19, %v575_v19  ;;  %v2311_v38 = vor.u32 %v2366_v22, %v2308_v25  ;;  %v582_v22 = vunpack.c.l.b16 %v425_v18 }
 0x10a   : > { %v644_v25 = vpack.c.b16 %v580_v20, %v580_v20 }
 0x10b   : > { %v1189_v45 = vadd.f32 %v1188_v40, %v1176_v39  ;;  %v2299_v39 = vor.u32 %v2397_v27, %v2298_v26 }
 0x10f   : > { %v1190_v58 = vpop.f32.mrf.mxu3  ;;  %v1201_v59 = vpop.f32.mrf.mxu0 }
 0x110   : > { %v1177_v53 = vpop.f32.mrf.mxu2  ;;  %v1202_v0 = vadd.f32 %v1201_v59, %v1189_v45  ;;  %v1214_v1 = vpop.f32.mrf.mxu1  ;;  %v640_v58 = vpack.c.b16 %v576_v50, %v576_v50  ;;  %v2324_v59 = vld [vmem:[%s2911_s19 + $0x1f8] sm:$0x10] }
 0x111   : > { %v579_v53 = vunpack.c.h.b16 %v423_v48 }
 0x112   : > { %v1215_v6 = vadd.f32 %v1214_v1, %v1202_v0  ;;  %1616 = vmatmul.bf16.vlgmr.msrb.gmra.mxu0 %v632_v54  ;;  %1629 = vmatmul.bf16.vlgmr.msrb.gmra.mxu1 %v633_v60  ;;  %v2322_v54 = vld [vmem:[%s2911_s19 + $0xf8] sm:$0xf]  ;;  %v2314_v60 = vld [vmem:[%s2911_s19 + $0xf0] sm:$0xf]  ;;  %v641_v0 = vpack.c.b16 %v577_v51, %v577_v51  ;;  %v642_v1 = vpack.c.b16 %v578_v52, %v578_v52 }
 0x113   : > { %1719 = vmatpush.bf16.xpose.msrb.mxu0 %v2283_v5  ;;  %1732 = vmatpush.bf16.xpose.msrb.mxu1 %v2287_v7  ;;  %v2323_v7 = vor.u32 %v2400_v55, %v2322_v54 }
 0x114   : > { %1655 = vmatmul.bf16.vlgmr.msrb.gmra.mxu3 %v635_v2  ;;  %v2367_v2 = vld [vmem:[%s2911_s19 + $0xf4] sm:$0xf] }
 0x115   : > { %1642 = vmatmul.bf16.vlgmr.msrb.gmra.mxu2 %v634_v61  ;;  %1758 = vmatpush.bf16.xpose.msrb.mxu3 %v2295_v4  ;;  %v2399_v61 = vld [vmem:[%s2911_s19 + $0x1ec] sm:$0x10] }
 0x116   : > { %1745 = vmatpush.bf16.xpose.msrb.mxu2 %v2291_v3  ;;  %v2316_v3 = vld [vmem:[%s2911_s19 + $0x1f0] sm:$0x10] }
 0x117   : > { %v1240_v10 = vpop.f32.mrf.mxu3  ;;  %v1203_v11 = vpop.f32.mrf.mxu0 }
 0x118   : > { %v1227_v8 = vpop.f32.mrf.mxu2  ;;  %v1216_v13 = vpop.f32.mrf.mxu1  ;;  %v2319_v11 = vor.u32 %v2367_v2, %v2316_v3 }
 0x119   : > { %v1228_v9 = vadd.f32 %v1227_v8, %v1215_v6  ;;  %v643_v6 = vpack.c.b16 %v579_v53, %v579_v53  ;;  %v2327_v8 = vor.u32 %v2368_v56, %v2324_v59 }
 0x11b   : > { %v1241_v15 = vadd.f32 %v1240_v10, %v1228_v9  ;;  %v2315_v9 = vor.u32 %v2399_v61, %v2314_v60 }
 0x11f   : > { %v1242_v28 = vpop.f32.mrf.mxu3  ;;  %v1253_v29 = vpop.f32.mrf.mxu0 }
 0x120   : > { %v1229_v23 = vpop.f32.mrf.mxu2  ;;  %v1254_v34 = vadd.f32 %v1253_v29, %v1241_v15  ;;  %v1266_v35 = vpop.f32.mrf.mxu1  ;;  %v645_v28 = vpack.c.b16 %v581_v21, %v581_v21  ;;  %v646_v29 = vpack.c.b16 %v582_v22, %v582_v22 }
 0x121   : > { %v583_v23 = vunpack.c.h.b16 %v425_v18 }
 0x122   : > { %v1267_v40 = vadd.f32 %v1266_v35, %v1254_v34  ;;  %1668 = vmatmul.bf16.vlgmr.msra.gmra.mxu0 %v636_v24  ;;  %1681 = vmatmul.bf16.vlgmr.msra.gmra.mxu1 %v637_v30 }
 0x123   : > { %1771 = vmatpush.bf16.xpose.msra.mxu0 %v2299_v39  ;;  %1784 = vmatpush.bf16.xpose.msra.mxu1 %v2303_v41  ;;  %v647_v32 = vpack.c.b16 %v583_v23, %v583_v23 }
 0x124   : > { %1707 = vmatmul.bf16.vlgmr.msra.gmra.mxu3 %v639_v36 }
 0x125   : > { %1694 = vmatmul.bf16.vlgmr.msra.gmra.mxu2 %v638_v31  ;;  %1810 = vmatpush.bf16.xpose.msra.mxu3 %v2311_v38  ;;  %v426_v38 = vld [vmem:[%s2904_s15 + $0xf0] sm:$0xff] }
 0x126   : > { %1797 = vmatpush.bf16.xpose.msra.mxu2 %v2307_v37 }
 0x127   : > { %v1292_v44 = vpop.f32.mrf.mxu3  ;;  %v1255_v45 = vpop.f32.mrf.mxu0 }
 0x128   : > { %v1279_v42 = vpop.f32.mrf.mxu2  ;;  %v1268_v47 = vpop.f32.mrf.mxu1 }
 0x129   : > { %v1280_v43 = vadd.f32 %v1279_v42, %v1267_v40  ;;  %v427_v40 = vld [vmem:[%s2904_s15 + $0xf8] sm:$0xff]  ;;  %v584_v42 = vunpack.c.l.b16 %v426_v38 }
 0x12a   : > { %v587_v45 = vunpack.c.h.b16 %v427_v40 }
 0x12b   : > { %v1293_v49 = vadd.f32 %v1292_v44, %v1280_v43  ;;  %v585_v43 = vunpack.c.h.b16 %v426_v38  ;;  %v586_v44 = vunpack.c.l.b16 %v427_v40  ;;  %v648_v47 = vpack.c.b16 %v584_v42, %v584_v42 }
 0x12c   : > { %v651_v54 = vpack.c.b16 %v587_v45, %v587_v45 }
 0x12d   : > { %v649_v50 = vpack.c.b16 %v585_v43, %v585_v43  ;;  %v650_v51 = vpack.c.b16 %v586_v44, %v586_v44 }
 0x12f   : > { %v1294_v62 = vpop.f32.mrf.mxu3  ;;  %v1305_v63 = vpop.f32.mrf.mxu0 }
 0x130   : > { %v1281_v57 = vpop.f32.mrf.mxu2  ;;  %v1306_v4 = vadd.f32 %v1305_v63, %v1293_v49  ;;  %v1318_v5 = vpop.f32.mrf.mxu1 }
 0x132   : > { %v1319_v10 = vadd.f32 %v1318_v5, %v1306_v4  ;;  %1720 = vmatmul.bf16.vlgmr.msrb.gmra.mxu0 %v640_v58  ;;  %1733 = vmatmul.bf16.vlgmr.msrb.gmra.mxu1 %v641_v0 }
 0x133   : > { %1823 = vmatpush.bf16.xpose.msrb.mxu0 %v2315_v9  ;;  %1836 = vmatpush.bf16.xpose.msrb.mxu1 %v2319_v11 }
 0x134   : > { %1759 = vmatmul.bf16.vlgmr.msrb.gmra.mxu3 %v643_v6 }
 0x135   : > { %1746 = vmatmul.bf16.vlgmr.msrb.gmra.mxu2 %v642_v1  ;;  %1862 = vmatpush.bf16.xpose.msrb.mxu3 %v2327_v8 }
 0x136   : > { %1849 = vmatpush.bf16.xpose.msrb.mxu2 %v2323_v7 }
 0x137   : > { %v1344_v14 = vpop.f32.mrf.mxu3  ;;  %v1307_v15 = vpop.f32.mrf.mxu0 }
 0x138   : > { %v1331_v12 = vpop.f32.mrf.mxu2  ;;  %v1320_v17 = vpop.f32.mrf.mxu1 }
 0x139   : > { %v1332_v13 = vadd.f32 %v1331_v12, %v1319_v10 }
 0x13b   : > { %v1345_v19 = vadd.f32 %v1344_v14, %v1332_v13 }
 0x13f   : > { %v1346_v26 = vpop.f32.mrf.mxu3  ;;  %v1357_v27 = vpop.f32.mrf.mxu0 }
 0x140   : > { %v1333_v24 = vpop.f32.mrf.mxu2  ;;  %v1358_v30 = vadd.f32 %v1357_v27, %v1345_v19  ;;  %v1370_v31 = vpop.f32.mrf.mxu1 }
 0x142   : > { %v1371_v33 = vadd.f32 %v1370_v31, %v1358_v30  ;;  %1772 = vmatmul.bf16.vlgmr.msra.gmra.mxu0 %v644_v25  ;;  %1785 = vmatmul.bf16.vlgmr.msra.gmra.mxu1 %v645_v28 }
 0x144   : > { %1811 = vmatmul.bf16.vlgmr.msra.gmra.mxu3 %v647_v32 }
 0x145   : > { %1798 = vmatmul.bf16.vlgmr.msra.gmra.mxu2 %v646_v29 }
 0x147   : > { %v1396_v36 = vpop.f32.mrf.mxu3  ;;  %v1359_v37 = vpop.f32.mrf.mxu0 }
 0x148   : > { %v1383_v34 = vpop.f32.mrf.mxu2  ;;  %v1372_v39 = vpop.f32.mrf.mxu1 }
 0x149   : > { %v1384_v35 = vadd.f32 %v1383_v34, %v1371_v33 }
 0x14b   : > { %v1397_v41 = vadd.f32 %v1396_v36, %v1384_v35 }
 0x14f   : > { %v1398_v48 = vpop.f32.mrf.mxu3  ;;  %v1409_v49 = vpop.f32.mrf.mxu0 }
 0x150   : > { %v1385_v46 = vpop.f32.mrf.mxu2  ;;  %v1410_v52 = vadd.f32 %v1409_v49, %v1397_v41  ;;  %v1422_v53 = vpop.f32.mrf.mxu1 }
 0x152   : > { %v1423_v55 = vadd.f32 %v1422_v53, %v1410_v52  ;;  %1824 = vmatmul.bf16.vlgmr.msrb.gmra.mxu0 %v648_v47  ;;  %1837 = vmatmul.bf16.vlgmr.msrb.gmra.mxu1 %v649_v50 }
 0x154   : > { %1863 = vmatmul.bf16.vlgmr.msrb.gmra.mxu3 %v651_v54 }
 0x155   : > { %1850 = vmatmul.bf16.vlgmr.msrb.gmra.mxu2 %v650_v51 }
 0x157   : > { %v1448_v58 = vpop.f32.mrf.mxu3  ;;  %v1411_v59 = vpop.f32.mrf.mxu0 }
 0x158   : > { %v1435_v56 = vpop.f32.mrf.mxu2  ;;  %v1424_v60 = vpop.f32.mrf.mxu1 }
 0x159   : > { %v1436_v57 = vadd.f32 %v1435_v56, %v1423_v55 }
 0x15b   : > { %v1449_v61 = vadd.f32 %v1448_v58, %v1436_v57 }
 0x15f   : > { %v1450_v63 = vpop.f32.mrf.mxu3  ;;  %v1461_v0 = vpop.f32.mrf.mxu0 }
 0x160   : > { %v1437_v62 = vpop.f32.mrf.mxu2  ;;  %v1474_v1 = vpop.f32.mrf.mxu1  ;;  %v1462_v14 = vadd.f32 %v1461_v0, %v1449_v61 }
 0x162   : > { %v1475_v19 = vadd.f32 %v1474_v1, %v1462_v14 }
 0x167   : > { %v1500_v3 = vpop.f32.mrf.mxu3  ;;  %v1463_v4 = vpop.f32.mrf.mxu0 }
 0x168   : > { %v1487_v2 = vpop.f32.mrf.mxu2  ;;  %v1476_v5 = vpop.f32.mrf.mxu1 }
 0x169   : > { %v1488_v20 = vadd.f32 %v1487_v2, %v1475_v19 }
 0x16b   : > { %v1501_v22 = vadd.f32 %v1500_v3, %v1488_v20 }
 0x16f   : > { %v1502_v7 = vpop.f32.mrf.mxu3  ;;  %v1513_v8 = vpop.f32.mrf.mxu0 }
 0x170   : > { %v1489_v6 = vpop.f32.mrf.mxu2  ;;  %v1526_v9 = vpop.f32.mrf.mxu1  ;;  %v1514_v26 = vadd.f32 %v1513_v8, %v1501_v22 }
 0x172   : > { %v1527_v27 = vadd.f32 %v1526_v9, %v1514_v26 }
 0x177   : > { %v1552_v11 = vpop.f32.mrf.mxu3  ;;  %v1515_v12 = vpop.f32.mrf.mxu0 }
 0x178   : > { %v1539_v10 = vpop.f32.mrf.mxu2  ;;  %v1528_v13 = vpop.f32.mrf.mxu1 }
 0x179   : > { %v1540_v29 = vadd.f32 %v1539_v10, %v1527_v27 }
 0x17b   : > { %v1553_v33 = vadd.f32 %v1552_v11, %v1540_v29 }
 0x17f   : > { %v1554_v16 = vpop.f32.mrf.mxu3  ;;  %v1565_v17 = vpop.f32.mrf.mxu0 }
 0x180   : > { %v1541_v15 = vpop.f32.mrf.mxu2  ;;  %v1578_v18 = vpop.f32.mrf.mxu1  ;;  %v1566_v34 = vadd.f32 %v1565_v17, %v1553_v33 }
 0x182   : > { %v1579_v39 = vadd.f32 %v1578_v18, %v1566_v34 }
 0x187   : > { %v1604_v23 = vpop.f32.mrf.mxu3  ;;  %v1567_v24 = vpop.f32.mrf.mxu0 }
 0x188   : > { %v1591_v21 = vpop.f32.mrf.mxu2  ;;  %v1580_v25 = vpop.f32.mrf.mxu1 }
 0x189   : > { %v1592_v40 = vadd.f32 %v1591_v21, %v1579_v39 }
 0x18b   : > { %v1605_v42 = vadd.f32 %v1604_v23, %v1592_v40 }
 0x18f   : > { %v1606_v30 = vpop.f32.mrf.mxu3  ;;  %v1617_v31 = vpop.f32.mrf.mxu0 }
 0x190   : > { %v1593_v28 = vpop.f32.mrf.mxu2  ;;  %v1630_v32 = vpop.f32.mrf.mxu1  ;;  %v1618_v46 = vadd.f32 %v1617_v31, %v1605_v42 }
 0x191   : > { %v395_v28 = vld [vmem:[#allocation2] sm:$0xff] }
 0x192   : > { %v1631_v47 = vadd.f32 %v1630_v32, %v1618_v46 }
 0x197   : > { %v1656_v36 = vpop.f32.mrf.mxu3  ;;  %v1619_v37 = vpop.f32.mrf.mxu0 }
 0x198   : > { %v1643_v35 = vpop.f32.mrf.mxu2  ;;  %v1632_v38 = vpop.f32.mrf.mxu1 }
 0x199   : > { %v1644_v49 = vadd.f32 %v1643_v35, %v1631_v47 }
 0x19b   : > { %v1657_v53 = vadd.f32 %v1656_v36, %v1644_v49 }
 0x19f   : > { %v1658_v43 = vpop.f32.mrf.mxu3  ;;  %v1669_v44 = vpop.f32.mrf.mxu0 }
 0x1a0   : > { %v1645_v41 = vpop.f32.mrf.mxu2  ;;  %v1682_v45 = vpop.f32.mrf.mxu1  ;;  %v1670_v54 = vadd.f32 %v1669_v44, %v1657_v53 }
 0x1a2   : > { %v1683_v59 = vadd.f32 %v1682_v45, %v1670_v54 }
 0x1a7   : > { %v1708_v50 = vpop.f32.mrf.mxu3  ;;  %v1671_v51 = vpop.f32.mrf.mxu0 }
 0x1a8   : > { %v1695_v48 = vpop.f32.mrf.mxu2  ;;  %v1684_v52 = vpop.f32.mrf.mxu1 }
 0x1a9   : > { %v1696_v60 = vadd.f32 %v1695_v48, %v1683_v59 }
 0x1ab   : > { %v1709_v62 = vadd.f32 %v1708_v50, %v1696_v60 }
 0x1af   : > { %v1710_v56 = vpop.f32.mrf.mxu3  ;;  %v1721_v57 = vpop.f32.mrf.mxu0 }
 0x1b0   : > { %v1697_v55 = vpop.f32.mrf.mxu2  ;;  %v1734_v58 = vpop.f32.mrf.mxu1  ;;  %v1722_v2 = vadd.f32 %v1721_v57, %v1709_v62 }
 0x1b2   : > { %v1735_v3 = vadd.f32 %v1734_v58, %v1722_v2 }
 0x1b7   : > { %v1760_v63 = vpop.f32.mrf.mxu3  ;;  %v1723_v0 = vpop.f32.mrf.mxu0 }
 0x1b8   : > { %v1747_v61 = vpop.f32.mrf.mxu2  ;;  %v1736_v1 = vpop.f32.mrf.mxu1 }
 0x1b9   : > { %v1748_v5 = vadd.f32 %v1747_v61, %v1735_v3 }
 0x1bb   : > { %v1761_v9 = vadd.f32 %v1760_v63, %v1748_v5 }
 0x1bf   : > { %v1762_v6 = vpop.f32.mrf.mxu3  ;;  %v1773_v7 = vpop.f32.mrf.mxu0 }
 0x1c0   : > { %v1749_v4 = vpop.f32.mrf.mxu2  ;;  %v1786_v8 = vpop.f32.mrf.mxu1  ;;  %v1774_v10 = vadd.f32 %v1773_v7, %v1761_v9 }
 0x1c2   : > { %v1787_v15 = vadd.f32 %v1786_v8, %v1774_v10 }
 0x1c7   : > { %v1812_v12 = vpop.f32.mrf.mxu3  ;;  %v1775_v13 = vpop.f32.mrf.mxu0 }
 0x1c8   : > { %v1799_v11 = vpop.f32.mrf.mxu2  ;;  %v1788_v14 = vpop.f32.mrf.mxu1 }
 0x1c9   : > { %v1800_v16 = vadd.f32 %v1799_v11, %v1787_v15 }
 0x1cb   : > { %v1813_v18 = vadd.f32 %v1812_v12, %v1800_v16 }
 0x1cf   : > { %v1814_v19 = vpop.f32.mrf.mxu3  ;;  %v1825_v20 = vpop.f32.mrf.mxu0 }
 0x1d0   : > { %v1801_v17 = vpop.f32.mrf.mxu2  ;;  %v1838_v21 = vpop.f32.mrf.mxu1  ;;  %v1826_v22 = vadd.f32 %v1825_v20, %v1813_v18 }
 0x1d2   : > { %v1839_v23 = vadd.f32 %v1838_v21, %v1826_v22 }
 0x1d7   : > { %v1864_v26 = vpop.f32.mrf.mxu3  ;;  %v1827_v27 = vpop.f32.mrf.mxu0 }
 0x1d8   : > { %v1851_v24 = vpop.f32.mrf.mxu2  ;;  %v1840_v29 = vpop.f32.mrf.mxu1 }
 0x1d9   : > { %v1852_v25 = vadd.f32 %v1851_v24, %v1839_v23 }
 0x1db   : > { %v1865_v30 = vadd.f32 %v1864_v26, %v1852_v25 }
 0x1dc   : > { %1874 = sbr.rel (%p2328_p1) target bundleno = 752 (0x2f0), region = 80 }
 0x1dd   : > { %v1868_v31 = vadd.f32 %v1865_v30, %v395_v28 }
 0x1df   : > { %1870 = vst.msk [vmem:[#allocation2] sm:$0xff] %vm1869_vm1, %v1868_v31  ;;  %v1866_v33 = vpop.f32.mrf.mxu3 }
 0x1e0   : > { %v1853_v32 = vpop.f32.mrf.mxu2 }
 0x1e1   : > { %v1883_v34 = vld [vmem:[#allocation8 + $0x8] sm:$0x3]  ;;  %vm1891_vm2 = vcmask 1041408   ;;  %v1882_v35 = vld [vmem:[#allocation8] sm:$0xff]  ;;  %v2492_v37 = vld [vmem:[#allocation7] ss:$0 sm:$0xff] }
 0x1e2   : > { %2329 = vmatpush.msk.msra.mxu0 %vm1891_vm2, %v1883_v34  ;;  %v1918_v40 = vld [vmem:[%s3122_s5 + $0x8] sm:$0x3]  ;;  %v1917_v41 = vld [vmem:[%s3122_s5] sm:$0xff]  ;;  %v2493_v42 = vld [vmem:[#allocation10] ss:$0 sm:$0xff]  ;;  %vm1949_vm3 = vcmask 15360  }
 0x1e3   : > { %2331 = vmatpush.msk.msra.mxu1 %vm1891_vm2, %v1918_v40  ;;  %v2494_v47 = vld [vmem:[#allocation11] ss:$0 sm:$0xff] }
 0x1e4   : > { %1910 = vmatpush.msra.mxu0 %v1882_v35 }
 0x1e5   : > { %1944 = vmatpush.msra.mxu1 %v1917_v41 }
 0x1e6   : > { %v1875_v36 = vld [vmem:[#allocation2] sm:$0xff] }
 0x1e7   : > { %v1880_v38 = vadd.f32 %v2492_v37, %v1875_v36 }
 0x1e9   : > { %v1881_v39 = vmax.f32 %v1880_v38, 0.0 }
 0x1eb   : > { %2330 = vmatmul.msk.f32.vlgmr.msra.gmra.mxu0 %vm1869_vm1, %v1881_v39 }
 0x268   : > { %v1912_v43 = vpop.f32.mrf.mxu0 }
 0x269   : > { %v1913_v44 = vadd.f32 %v2493_v42, %v1912_v43 }
 0x26b   : > { %v1915_v45 = vmax.f32 %v1913_v44, 0.0 }
 0x26d   : > { %v1916_v46 = vadd.f32 %v1915_v45, %v1881_v39 }
 0x26f   : > { %2332 = vmatmul.msk.f32.vlgmr.msra.gmra.mxu1 %vm1869_vm1, %v1916_v46 }
 0x2ec   : > { %v1946_v48 = vpop.f32.mrf.mxu1 }
 0x2ed   : > { %v1947_v49 = vadd.f32 %v2494_v47, %v1946_v48 }
 0x2ef   : > { %1950 = vst.msk [vmem:[%s3124_s7] sm:$0xff] %vm1949_vm3, %v1947_v49 }
 0x2f0 PF: > { %p22_p3 = scmp.ge.s32.totalorder %s2837_s13, 10   ;;  %s3135_s24 = smov %s2717_s25 }
 0x2f1   : > { %s3136_s25 = smov %s2721_s26  ;;  %s3137_s26 = smov %s2849_s17 }
 0x2f2   : > { %s3138_s27 = smov %s2837_s13  ;;  %24 = sbr.rel (!%p22_p3) target bundleno = 11 (0xb), region = 121 }
 0x2f7   :  { %1962 = vsyncpa [#allocation4], 1 }
 0x2f8   :  { %1964 = vsyncpa [#allocation4 + $0x1], 1 }
 0x2f9   :  { %1965 = vsyncpa [#allocation6], 1 }
 0x2fa   :  { %1967 = vsyncpa [#allocation6 + $0x1], 1 }
 0x2fb   :  { %1968 = vsyncpa [#allocation9], 1 }
 0x2fc   :  { %1969 = vsyncpa [#allocation12], 1 }

</bundles_post_ra>
